<compile_context>
chip_gen: v6e
topology: v6e:2x2x1
jax: 0.10.0
libtpu: 0.0.40
codegen_flags: <defaults>
</compile_context>

<pallas_src>
import functools

import jax
import jax.numpy as jnp
from jax import lax
from jax.experimental import pallas as pl
from jax.experimental.pallas import tpu as pltpu


# ----------------------------------------------------------------------------
# Pallas kernels
# ----------------------------------------------------------------------------
def _small_linear_kernel(x_ref, w_ref, b_ref, o_ref):
    """y = x @ w + b  (tiny whole-array matmul; used for w_proj / time MLP)."""
    y = jnp.dot(x_ref[...], w_ref[...], preferred_element_type=jnp.float32)
    o_ref[...] = (y + b_ref[...]).astype(o_ref.dtype)


def small_linear_pallas(x2d, w, b, out_dtype=jnp.float32):
    """x2d: [M, K] (M tiny), w: [K, N], b: [N] -> [M, N]."""
    M, K = x2d.shape
    Kw, N = w.shape
    assert K == Kw
    return pl.pallas_call(
        _small_linear_kernel,
        out_shape=jax.ShapeDtypeStruct((M, N), out_dtype),
        grid=(1,),
        in_specs=[
            pl.BlockSpec((M, K), lambda i: (0, 0)),
            pl.BlockSpec((K, N), lambda i: (0, 0)),
            pl.BlockSpec((1, N), lambda i: (0, 0)),
        ],
        out_specs=pl.BlockSpec((M, N), lambda i: (0, 0)),
    )(x2d, w, b.reshape(1, N).astype(jnp.float32))


def _fused_unet_block_kernel(x_ref, temb_ref, ctx_ref, kmask_ref,
                             cin_w_ref, cin_b_ref,
                             wq_ref, bq_ref, wkv_ref, bkv_ref,
                             wo_ref, bo_ref, cout_w_ref, cout_b_ref,
                             o_ref):
    """conv_in + temb add + cross-attn (+residual) + conv_out, one q-tile.

    All matmuls run bf16 on the MXU with f32 accumulation; softmax and
    residual math stay in f32 (VPU/EUP).
    """
    DP = wq_ref.shape[0]

    # ---- conv_in (1x1) + timestep embedding -------------------------------
    x = x_ref[0]                                                  # [TQ, CIN_P] bf16
    h = jnp.dot(x, cin_w_ref[...],
                preferred_element_type=jnp.float32) + cin_b_ref[...]
    h = h + temb_ref[0]                                           # [TQ, DP] f32
    h_bf = h.astype(jnp.bfloat16)

    # ---- fused K/V projection of the (padded) context ----------------------
    ctx = ctx_ref[0]                                              # [LKP, DP] bf16
    kv = jnp.dot(ctx, wkv_ref[...],
                 preferred_element_type=jnp.float32) + bkv_ref[...]
    k = kv[:, :DP].astype(jnp.bfloat16)                           # [LKP, DP]
    v = kv[:, DP:].astype(jnp.bfloat16)                           # [LKP, DP]

    # ---- Q projection + scaled-dot-product attention -----------------------
    q = jnp.dot(h_bf, wq_ref[...],
                preferred_element_type=jnp.float32) + bq_ref[...]
    scale = 1.0 / jnp.sqrt(jnp.float32(DP))
    s = lax.dot_general(q.astype(jnp.bfloat16), k,
                        (((1,), (1,)), ((), ())),
                        preferred_element_type=jnp.float32) * scale   # [TQ, LKP]
    s = s + kmask_ref[...]                                        # -1e30 on pad keys
    m = jnp.max(s, axis=-1, keepdims=True)
    p = jnp.exp(s - m)
    l = jnp.sum(p, axis=-1, keepdims=True)
    p = p * pl.reciprocal(l, approx=True)                         # EUP divide

    a = jnp.dot(p.astype(jnp.bfloat16), v,
                preferred_element_type=jnp.float32)               # [TQ, DP]
    attn = (jnp.dot(a.astype(jnp.bfloat16), wo_ref[...],
                    preferred_element_type=jnp.float32)
            + bo_ref[...] + h)                                    # residual (incl. temb)

    # ---- conv_out (1x1) into the padded, lane-dense output layout ----------
    out = (jnp.dot(attn.astype(jnp.bfloat16), cout_w_ref[...],
                   preferred_element_type=jnp.float32) + cout_b_ref[...])
    o_ref[0] = out.astype(o_ref.dtype)


def fused_unet_block(x_pad, temb3, ctx_pad, kmask, params, *, tq):
    """x_pad: [B, Lq, CIN_P] bf16, temb3: [B,1,DP] f32, ctx_pad: [B,LKP,DP] bf16,
    kmask: [1, LKP] f32 -> padded output [B, Lq, DP] f32."""
    B, Lq, CIN_P = x_pad.shape
    DP = params["wq"].shape[0]
    LKP = ctx_pad.shape[1]
    assert Lq % tq == 0
    nq = Lq // tq

    def wfull(shape):
        return pl.BlockSpec(shape, lambda b, q: (0, 0))

    return pl.pallas_call(
        _fused_unet_block_kernel,
        out_shape=jax.ShapeDtypeStruct((B, Lq, DP), jnp.float32),
        grid=(B, nq),
        in_specs=[
            pl.BlockSpec((1, tq, CIN_P), lambda b, q: (b, q, 0)),   # x
            pl.BlockSpec((1, 1, DP), lambda b, q: (b, 0, 0)),       # temb
            pl.BlockSpec((1, LKP, DP), lambda b, q: (b, 0, 0)),     # ctx (resident)
            pl.BlockSpec((1, LKP), lambda b, q: (0, 0)),            # key mask bias
            wfull((CIN_P, DP)), wfull((1, DP)),                     # conv_in
            wfull((DP, DP)), wfull((1, DP)),                        # Wq, bq
            wfull((DP, 2 * DP)), wfull((1, 2 * DP)),                # fused Wkv, bkv
            wfull((DP, DP)), wfull((1, DP)),                        # Wo, bo
            wfull((DP, DP)), wfull((1, DP)),                        # conv_out
        ],
        out_specs=pl.BlockSpec((1, tq, DP), lambda b, q: (b, q, 0)),
        compiler_params=pltpu.CompilerParams(
            dimension_semantics=("parallel", "parallel")),
    )(x_pad, temb3, ctx_pad, kmask,
      params["conv_in_w"], params["conv_in_b"].reshape(1, DP),
      params["wq"], params["bq"].reshape(1, DP),
      params["wkv"], params["bkv"].reshape(1, 2 * DP),
      params["wo"], params["bo"].reshape(1, DP),
      params["conv_out_w"], params["conv_out_b"].reshape(1, DP))


# ----------------------------------------------------------------------------
# Glue: timestep embedding, parameter init, forward pass
# ----------------------------------------------------------------------------
def timestep_embedding(t, dim):
    """Sinusoidal timestep embedding (cos | sin), diffusers convention."""
    half = dim // 2
    freqs = jnp.exp(-jnp.log(10000.0) * jnp.arange(half, dtype=jnp.float32) / half)
    args = t.astype(jnp.float32)[:, None] * freqs[None, :]
    return jnp.concatenate([jnp.cos(args), jnp.sin(args)], axis=-1)


def init_params(key, *, w_dim, cross_dim, lat_ch, d_pad=128, cin_pad=128):
    """Stand-in parameters, padded to 128-lane-friendly shapes, weights in bf16."""
    ks = jax.random.split(key, 8)

    def dense(k, fan_in, fan_out):
        return jax.random.normal(k, (fan_in, fan_out), jnp.float32) / jnp.sqrt(fan_in)

    def pad_to(a, shape):
        out = jnp.zeros(shape, a.dtype)
        return out.at[:a.shape[0], :a.shape[1]].set(a)

    wp_w = pad_to(dense(ks[0], w_dim, cross_dim), (w_dim, d_pad))       # zero pad cols
    conv_in_w = pad_to(dense(ks[1], lat_ch, d_pad), (cin_pad, d_pad))   # zero pad rows
    conv_out_w = pad_to(dense(ks[7], d_pad, lat_ch), (d_pad, d_pad))    # zero pad cols

    return {
        # w_proj_model stand-in (maps W+ codes into the padded cross-attn space)
        "wp_w": wp_w.astype(jnp.bfloat16),
        "wp_b": jnp.zeros((d_pad,), jnp.float32),
        # unet stand-in
        "conv_in_w": conv_in_w.astype(jnp.bfloat16),
        "conv_in_b": jnp.zeros((d_pad,), jnp.float32),
        "time_w": dense(ks[2], d_pad, d_pad).astype(jnp.bfloat16),
        "time_b": jnp.zeros((d_pad,), jnp.float32),
        "wq": dense(ks[3], d_pad, d_pad).astype(jnp.bfloat16),
        "bq": jnp.zeros((d_pad,), jnp.float32),
        "wkv": jnp.concatenate([dense(ks[4], d_pad, d_pad),
                                dense(ks[5], d_pad, d_pad)],
                               axis=1).astype(jnp.bfloat16),
        "bkv": jnp.zeros((2 * d_pad,), jnp.float32),
        "wo": dense(ks[6], d_pad, d_pad).astype(jnp.bfloat16),
        "bo": jnp.zeros((d_pad,), jnp.float32),
        "conv_out_w": conv_out_w.astype(jnp.bfloat16),
        "conv_out_b": jnp.zeros((d_pad,), jnp.float32),
    }


@jax.jit
def wplus_adapter_forward(params, noisy_latents, timesteps,
                          encoder_hidden_states, image_embeds):
    # layout: noisy_latents is NCHW (PyTorch); channels-last [B, H*W, C] inside.
    B, C, H, W = noisy_latents.shape
    Lq = H * W
    DP = params["wq"].shape[0]
    CIN_P = params["conv_in_w"].shape[0]

    L_text, D_text = encoder_hidden_states.shape[1], encoder_hidden_states.shape[2]
    Bw, Nw, Dw = image_embeds.shape
    n_valid = L_text + Nw
    LKP = 128 * pl.cdiv(n_valid, 128)          # pad context length to lane width

    # ---- w_proj_model(image_embeds) -> wplus_tokens (padded cross-attn dim) ----
    wplus = small_linear_pallas(
        image_embeds.reshape(Bw * Nw, Dw).astype(jnp.bfloat16),
        params["wp_w"], params["wp_b"], out_dtype=jnp.bfloat16)
    wplus_tokens = wplus.reshape(Bw, Nw, DP)

    # ---- cat([encoder_hidden_states, wplus_tokens], dim=1) into padded ctx ----
    ctx_pad = jnp.zeros((B, LKP, DP), jnp.bfloat16)
    ctx_pad = ctx_pad.at[:, :L_text, :D_text].set(
        encoder_hidden_states.astype(jnp.bfloat16))
    ctx_pad = ctx_pad.at[:, L_text:n_valid, :].set(wplus_tokens)
    kmask = jnp.where(jnp.arange(LKP) < n_valid, 0.0, -1e30)
    kmask = kmask.astype(jnp.float32).reshape(1, LKP)

    # ---- timestep embedding MLP --------------------------------------------
    temb_sin = timestep_embedding(timesteps, DP)                    # [B, DP]
    temb = small_linear_pallas(temb_sin.astype(jnp.bfloat16),
                               params["time_w"], params["time_b"])  # [B, DP] f32
    temb3 = temb.reshape(B, 1, DP)

    # ---- pad latents to lane-dense channels, channels-last ------------------
    x = jnp.transpose(noisy_latents, (0, 2, 3, 1)).reshape(B, Lq, C)
    x_pad = jnp.zeros((B, Lq, CIN_P), jnp.bfloat16)
    x_pad = x_pad.at[:, :, :C].set(x.astype(jnp.bfloat16))

    # ---- fused conv_in + cross-attn + conv_out ------------------------------
    tq = 128 if Lq % 128 == 0 else Lq
    out_pad = fused_unet_block(x_pad, temb3, ctx_pad, kmask, params, tq=tq)

    # strip padded channels, back to NCHW
    y = out_pad[:, :, :C].reshape(B, H, W, C)
    return jnp.transpose(y, (0, 3, 1, 2))


# ----------------------------------------------------------------------------
# Main
# ----------------------------------------------------------------------------
if __name__ == "__main__":
    key = jax.random.PRNGKey(0)
    k_lat, k_ehs, k_emb, k_par = jax.random.split(key, 4)

    B, LAT_CH, H, W = 2, 4, 16, 16     # SD latent convention (small spatial)
    L_TEXT, CROSS_DIM = 8, 32          # text tokens / cross-attn dim
    N_W, W_DIM = 4, 32                 # W+ codes -> extra tokens
    D_PAD = 128                        # padded model / cross-attn dim (lane width)

    noisy_latents = jax.random.normal(k_lat, (B, LAT_CH, H, W), jnp.float32)   # NCHW
    timesteps = jnp.array([10, 500], dtype=jnp.int32)
    encoder_hidden_states = jax.random.normal(k_ehs, (B, L_TEXT, CROSS_DIM), jnp.float32)
    image_embeds = jax.random.normal(k_emb, (B, N_W, W_DIM), jnp.float32)

    params = init_params(k_par, w_dim=W_DIM, cross_dim=CROSS_DIM,
                         lat_ch=LAT_CH, d_pad=D_PAD)

    noise_pred = wplus_adapter_forward(params, noisy_latents, timesteps,
                                       encoder_hidden_states, image_embeds)
    noise_pred = jax.block_until_ready(noise_pred)

    assert noise_pred.shape == noisy_latents.shape, noise_pred.shape
    assert noise_pred.dtype == jnp.float32
    assert bool(jnp.all(jnp.isfinite(noise_pred)))
    print("KERNEL_OK")
</pallas_src>

<mosaic_0001>
module attributes {stable_mosaic.version = 11 : i64} {
  func.func @_small_linear_kernel(%arg0: i32, %arg1: memref<2x128xbf16, #tpu.memory_space<vmem>>, %arg2: memref<128x128xbf16, #tpu.memory_space<vmem>>, %arg3: memref<1x128xf32, #tpu.memory_space<vmem>>, %arg4: memref<2x128xf32, #tpu.memory_space<vmem>>) attributes {dimension_semantics = [#tpu.dimension_semantics<arbitrary>], iteration_bounds = array<i64: 1>, scalar_prefetch = 0 : i64, scratch_operands = 0 : i64, tpu.core_type = #tpu.core_type<tc>, window_params = [{pipeline_mode = #tpu.pipeline_mode<synchronous>, transform_indices = @transform_0, window_bounds = array<i64: 2, 128>}, {pipeline_mode = #tpu.pipeline_mode<synchronous>, transform_indices = @transform_1, window_bounds = array<i64: 128, 128>}, {pipeline_mode = #tpu.pipeline_mode<synchronous>, transform_indices = @transform_2, window_bounds = array<i64: 1, 128>}, {pipeline_mode = #tpu.pipeline_mode<synchronous>, transform_indices = @transform_3, window_bounds = array<i64: 2, 128>}]} {
    %c0 = arith.constant 0 : index
    %c0_0 = arith.constant 0 : index
    %0 = vector.load %arg1[%c0, %c0_0] : memref<2x128xbf16, #tpu.memory_space<vmem>>, vector<2x128xbf16>
    %c0_1 = arith.constant 0 : index
    %c0_2 = arith.constant 0 : index
    %1 = vector.load %arg2[%c0_1, %c0_2] : memref<128x128xbf16, #tpu.memory_space<vmem>>, vector<128x128xbf16>
    %cst = arith.constant dense<0.000000e+00> : vector<2x128xf32>
    %2 = tpu.matmul %0, %1, %cst {dimension_numbers = #tpu.dot_dimension_numbers<[1], [0], [0], [1], [0, 0, 1, 1], [], []>} : vector<2x128xbf16>, vector<128x128xbf16>, vector<2x128xf32> -> vector<2x128xf32>
    %c0_3 = arith.constant 0 : index
    %c0_4 = arith.constant 0 : index
    %3 = vector.load %arg3[%c0_3, %c0_4] : memref<1x128xf32, #tpu.memory_space<vmem>>, vector<1x128xf32>
    %4 = vector.broadcast %3 : vector<1x128xf32> to vector<2x128xf32>
    %5 = arith.addf %2, %4 : vector<2x128xf32>
    %c0_5 = arith.constant 0 : index
    %c0_6 = arith.constant 0 : index
    %6 = vector.load %arg4[%c0_5, %c0_6] : memref<2x128xf32, #tpu.memory_space<vmem>>, vector<2x128xf32>
    tpu.vector_store %arg4[%c0_5, %c0_6], %5 {strides = array<i32>} : memref<2x128xf32, #tpu.memory_space<vmem>>, vector<2x128xf32>,
    return
  }
  func.func @transform_0(%arg0: i32) -> (i32, i32) {
    %c0_i32 = arith.constant 0 : i32
    %c0_i32_0 = arith.constant 0 : i32
    %c0_i32_1 = arith.constant 0 : i32
    return %c0_i32, %c0_i32_0 : i32, i32
  }
  func.func @transform_1(%arg0: i32) -> (i32, i32) {
    %c0_i32 = arith.constant 0 : i32
    %c0_i32_0 = arith.constant 0 : i32
    %c0_i32_1 = arith.constant 0 : i32
    return %c0_i32, %c0_i32_0 : i32, i32
  }
  func.func @transform_2(%arg0: i32) -> (i32, i32) {
    %c0_i32 = arith.constant 0 : i32
    %c0_i32_0 = arith.constant 0 : i32
    %c0_i32_1 = arith.constant 0 : i32
    return %c0_i32, %c0_i32_0 : i32, i32
  }
  func.func @transform_3(%arg0: i32) -> (i32, i32) {
    %c0_i32 = arith.constant 0 : i32
    %c0_i32_0 = arith.constant 0 : i32
    %c0_i32_1 = arith.constant 0 : i32
    return %c0_i32, %c0_i32_0 : i32, i32
  }
}

module attributes {stable_mosaic.version = 11 : i64} {
  func.func @_small_linear_kernel(%arg0: i32, %arg1: memref<8x32xbf16, #tpu.memory_space<vmem>>, %arg2: memref<32x128xbf16, #tpu.memory_space<vmem>>, %arg3: memref<1x128xf32, #tpu.memory_space<vmem>>, %arg4: memref<8x128xbf16, #tpu.memory_space<vmem>>) attributes {dimension_semantics = [#tpu.dimension_semantics<arbitrary>], iteration_bounds = array<i64: 1>, scalar_prefetch = 0 : i64, scratch_operands = 0 : i64, tpu.core_type = #tpu.core_type<tc>, window_params = [{pipeline_mode = #tpu.pipeline_mode<synchronous>, transform_indices = @transform_0, window_bounds = array<i64: 8, 32>}, {pipeline_mode = #tpu.pipeline_mode<synchronous>, transform_indices = @transform_1, window_bounds = array<i64: 32, 128>}, {pipeline_mode = #tpu.pipeline_mode<synchronous>, transform_indices = @transform_2, window_bounds = array<i64: 1, 128>}, {pipeline_mode = #tpu.pipeline_mode<synchronous>, transform_indices = @transform_3, window_bounds = array<i64: 8, 128>}]} {
    %c0 = arith.constant 0 : index
    %c0_0 = arith.constant 0 : index
    %0 = vector.load %arg1[%c0, %c0_0] : memref<8x32xbf16, #tpu.memory_space<vmem>>, vector<8x32xbf16>
    %c0_1 = arith.constant 0 : index
    %c0_2 = arith.constant 0 : index
    %1 = vector.load %arg2[%c0_1, %c0_2] : memref<32x128xbf16, #tpu.memory_space<vmem>>, vector<32x128xbf16>
    %cst = arith.constant dense<0.000000e+00> : vector<8x128xf32>
    %2 = tpu.matmul %0, %1, %cst {dimension_numbers = #tpu.dot_dimension_numbers<[1], [0], [0], [1], [0, 0, 1, 1], [], []>} : vector<8x32xbf16>, vector<32x128xbf16>, vector<8x128xf32> -> vector<8x128xf32>
    %c0_3 = arith.constant 0 : index
    %c0_4 = arith.constant 0 : index
    %3 = vector.load %arg3[%c0_3, %c0_4] : memref<1x128xf32, #tpu.memory_space<vmem>>, vector<1x128xf32>
    %4 = vector.broadcast %3 : vector<1x128xf32> to vector<8x128xf32>
    %5 = arith.addf %2, %4 : vector<8x128xf32>
    %6 = arith.truncf %5 : vector<8x128xf32> to vector<8x128xbf16>
    %c0_5 = arith.constant 0 : index
    %c0_6 = arith.constant 0 : index
    %7 = vector.load %arg4[%c0_5, %c0_6] : memref<8x128xbf16, #tpu.memory_space<vmem>>, vector<8x128xbf16>
    tpu.vector_store %arg4[%c0_5, %c0_6], %6 {strides = array<i32>} : memref<8x128xbf16, #tpu.memory_space<vmem>>, vector<8x128xbf16>,
    return
  }
  func.func @transform_0(%arg0: i32) -> (i32, i32) {
    %c0_i32 = arith.constant 0 : i32
    %c0_i32_0 = arith.constant 0 : i32
    %c0_i32_1 = arith.constant 0 : i32
    return %c0_i32, %c0_i32_0 : i32, i32
  }
  func.func @transform_1(%arg0: i32) -> (i32, i32) {
    %c0_i32 = arith.constant 0 : i32
    %c0_i32_0 = arith.constant 0 : i32
    %c0_i32_1 = arith.constant 0 : i32
    return %c0_i32, %c0_i32_0 : i32, i32
  }
  func.func @transform_2(%arg0: i32) -> (i32, i32) {
    %c0_i32 = arith.constant 0 : i32
    %c0_i32_0 = arith.constant 0 : i32
    %c0_i32_1 = arith.constant 0 : i32
    return %c0_i32, %c0_i32_0 : i32, i32
  }
  func.func @transform_3(%arg0: i32) -> (i32, i32) {
    %c0_i32 = arith.constant 0 : i32
    %c0_i32_0 = arith.constant 0 : i32
    %c0_i32_1 = arith.constant 0 : i32
    return %c0_i32, %c0_i32_0 : i32, i32
  }
}

module attributes {stable_mosaic.version = 11 : i64} {
  func.func @_fused_unet_block_kernel(%arg0: i32, %arg1: i32, %arg2: memref<1x128x128xbf16, #tpu.memory_space<vmem>>, %arg3: memref<1x1x128xf32, #tpu.memory_space<vmem>>, %arg4: memref<1x128x128xbf16, #tpu.memory_space<vmem>>, %arg5: memref<1x128xf32, #tpu.memory_space<vmem>>, %arg6: memref<128x128xbf16, #tpu.memory_space<vmem>>, %arg7: memref<1x128xf32, #tpu.memory_space<vmem>>, %arg8: memref<128x128xbf16, #tpu.memory_space<vmem>>, %arg9: memref<1x128xf32, #tpu.memory_space<vmem>>, %arg10: memref<128x256xbf16, #tpu.memory_space<vmem>>, %arg11: memref<1x256xf32, #tpu.memory_space<vmem>>, %arg12: memref<128x128xbf16, #tpu.memory_space<vmem>>, %arg13: memref<1x128xf32, #tpu.memory_space<vmem>>, %arg14: memref<128x128xbf16, #tpu.memory_space<vmem>>, %arg15: memref<1x128xf32, #tpu.memory_space<vmem>>, %arg16: memref<1x128x128xf32, #tpu.memory_space<vmem>>) attributes {dimension_semantics = [#tpu.dimension_semantics<parallel>, #tpu.dimension_semantics<parallel>], iteration_bounds = array<i64: 2, 2>, scalar_prefetch = 0 : i64, scratch_operands = 0 : i64, tpu.core_type = #tpu.core_type<tc>, window_params = [{transform_indices = @transform_0, window_bounds = array<i64: 1, 128, 128>}, {transform_indices = @transform_1, window_bounds = array<i64: 1, 1, 128>}, {transform_indices = @transform_2, window_bounds = array<i64: 1, 128, 128>}, {pipeline_mode = #tpu.pipeline_mode<synchronous>, transform_indices = @transform_3, window_bounds = array<i64: 1, 128>}, {pipeline_mode = #tpu.pipeline_mode<synchronous>, transform_indices = @transform_4, window_bounds = array<i64: 128, 128>}, {pipeline_mode = #tpu.pipeline_mode<synchronous>, transform_indices = @transform_5, window_bounds = array<i64: 1, 128>}, {pipeline_mode = #tpu.pipeline_mode<synchronous>, transform_indices = @transform_6, window_bounds = array<i64: 128, 128>}, {pipeline_mode = #tpu.pipeline_mode<synchronous>, transform_indices = @transform_7, window_bounds = array<i64: 1, 128>}, {pipeline_mode = #tpu.pipeline_mode<synchronous>, transform_indices = @transform_8, window_bounds = array<i64: 128, 256>}, {pipeline_mode = #tpu.pipeline_mode<synchronous>, transform_indices = @transform_9, window_bounds = array<i64: 1, 256>}, {pipeline_mode = #tpu.pipeline_mode<synchronous>, transform_indices = @transform_10, window_bounds = array<i64: 128, 128>}, {pipeline_mode = #tpu.pipeline_mode<synchronous>, transform_indices = @transform_11, window_bounds = array<i64: 1, 128>}, {pipeline_mode = #tpu.pipeline_mode<synchronous>, transform_indices = @transform_12, window_bounds = array<i64: 128, 128>}, {pipeline_mode = #tpu.pipeline_mode<synchronous>, transform_indices = @transform_13, window_bounds = array<i64: 1, 128>}, {transform_indices = @transform_14, window_bounds = array<i64: 1, 128, 128>}]} {
    %c0 = arith.constant 0 : index
    %c0_0 = arith.constant 0 : index
    %c0_1 = arith.constant 0 : index
    %0 = vector.load %arg2[%c0, %c0_0, %c0_1] : memref<1x128x128xbf16, #tpu.memory_space<vmem>>, vector<1x128x128xbf16>
    %1 = vector.shape_cast %0 : vector<1x128x128xbf16> to vector<128x128xbf16>
    %c0_2 = arith.constant 0 : index
    %c0_3 = arith.constant 0 : index
    %2 = vector.load %arg6[%c0_2, %c0_3] : memref<128x128xbf16, #tpu.memory_space<vmem>>, vector<128x128xbf16>
    %cst = arith.constant dense<0.000000e+00> : vector<128x128xf32>
    %3 = tpu.matmul %1, %2, %cst {dimension_numbers = #tpu.dot_dimension_numbers<[1], [0], [0], [1], [0, 0, 1, 1], [], []>} : vector<128x128xbf16>, vector<128x128xbf16>, vector<128x128xf32> -> vector<128x128xf32>
    %c0_4 = arith.constant 0 : index
    %c0_5 = arith.constant 0 : index
    %4 = vector.load %arg7[%c0_4, %c0_5] : memref<1x128xf32, #tpu.memory_space<vmem>>, vector<1x128xf32>
    %5 = vector.broadcast %4 : vector<1x128xf32> to vector<128x128xf32>
    %6 = arith.addf %3, %5 : vector<128x128xf32>
    %c0_6 = arith.constant 0 : index
    %c0_7 = arith.constant 0 : index
    %c0_8 = arith.constant 0 : index
    %7 = vector.load %arg3[%c0_6, %c0_7, %c0_8] : memref<1x1x128xf32, #tpu.memory_space<vmem>>, vector<1x1x128xf32>
    %8 = vector.shape_cast %7 : vector<1x1x128xf32> to vector<1x128xf32>
    %9 = vector.broadcast %8 : vector<1x128xf32> to vector<128x128xf32>
    %10 = arith.addf %6, %9 : vector<128x128xf32>
    %11 = arith.truncf %10 : vector<128x128xf32> to vector<128x128xbf16>
    %c0_9 = arith.constant 0 : index
    %c0_10 = arith.constant 0 : index
    %c0_11 = arith.constant 0 : index
    %12 = vector.load %arg4[%c0_9, %c0_10, %c0_11] : memref<1x128x128xbf16, #tpu.memory_space<vmem>>, vector<1x128x128xbf16>
    %13 = vector.shape_cast %12 : vector<1x128x128xbf16> to vector<128x128xbf16>
    %c0_12 = arith.constant 0 : index
    %c0_13 = arith.constant 0 : index
    %14 = vector.load %arg10[%c0_12, %c0_13] : memref<128x256xbf16, #tpu.memory_space<vmem>>, vector<128x256xbf16>
    %cst_14 = arith.constant dense<0.000000e+00> : vector<128x256xf32>
    %15 = tpu.matmul %13, %14, %cst_14 {dimension_numbers = #tpu.dot_dimension_numbers<[1], [0], [0], [1], [0, 0, 1, 1], [], []>} : vector<128x128xbf16>, vector<128x256xbf16>, vector<128x256xf32> -> vector<128x256xf32>
    %c0_15 = arith.constant 0 : index
    %c0_16 = arith.constant 0 : index
    %16 = vector.load %arg11[%c0_15, %c0_16] : memref<1x256xf32, #tpu.memory_space<vmem>>, vector<1x256xf32>
    %17 = vector.broadcast %16 : vector<1x256xf32> to vector<128x256xf32>
    %18 = arith.addf %15, %17 : vector<128x256xf32>
    %19 = vector.extract_strided_slice %18 {offsets = [0, 0], sizes = [128, 128], strides = [1, 1]} : vector<128x256xf32> to vector<128x128xf32>
    %20 = arith.truncf %19 : vector<128x128xf32> to vector<128x128xbf16>
    %21 = vector.extract_strided_slice %18 {offsets = [0, 128], sizes = [128, 128], strides = [1, 1]} : vector<128x256xf32> to vector<128x128xf32>
    %22 = arith.truncf %21 : vector<128x128xf32> to vector<128x128xbf16>
    %c0_17 = arith.constant 0 : index
    %c0_18 = arith.constant 0 : index
    %23 = vector.load %arg8[%c0_17, %c0_18] : memref<128x128xbf16, #tpu.memory_space<vmem>>, vector<128x128xbf16>
    %cst_19 = arith.constant dense<0.000000e+00> : vector<128x128xf32>
    %24 = tpu.matmul %11, %23, %cst_19 {dimension_numbers = #tpu.dot_dimension_numbers<[1], [0], [0], [1], [0, 0, 1, 1], [], []>} : vector<128x128xbf16>, vector<128x128xbf16>, vector<128x128xf32> -> vector<128x128xf32>
    %c0_20 = arith.constant 0 : index
    %c0_21 = arith.constant 0 : index
    %25 = vector.load %arg9[%c0_20, %c0_21] : memref<1x128xf32, #tpu.memory_space<vmem>>, vector<1x128xf32>
    %26 = vector.broadcast %25 : vector<1x128xf32> to vector<128x128xf32>
    %27 = arith.addf %24, %26 : vector<128x128xf32>
    %cst_22 = arith.constant 1.280000e+02 : f32
    %28 = math.sqrt %cst_22 : f32
    %cst_23 = arith.constant 1.000000e+00 : f32
    %29 = arith.divf %cst_23, %28 : f32
    %30 = arith.truncf %27 : vector<128x128xf32> to vector<128x128xbf16>
    %cst_24 = arith.constant dense<0.000000e+00> : vector<128x128xf32>
    %31 = tpu.matmul %30, %20, %cst_24 {dimension_numbers = #tpu.dot_dimension_numbers<[1], [1], [0], [0], [0, 0, 1, 0], [], []>} : vector<128x128xbf16>, vector<128x128xbf16>, vector<128x128xf32> -> vector<128x128xf32>
    %32 = vector.broadcast %29 : f32 to vector<128x128xf32>
    %33 = arith.mulf %31, %32 : vector<128x128xf32>
    %c0_25 = arith.constant 0 : index
    %c0_26 = arith.constant 0 : index
    %34 = vector.load %arg5[%c0_25, %c0_26] : memref<1x128xf32, #tpu.memory_space<vmem>>, vector<1x128xf32>
    %35 = vector.broadcast %34 : vector<1x128xf32> to vector<128x128xf32>
    %36 = arith.addf %33, %35 : vector<128x128xf32>
    %cst_27 = arith.constant dense<0xFF800000> : vector<128xf32>
    %37 = vector.multi_reduction <maximumf>, %36, %cst_27 [1] : vector<128x128xf32> to vector<128xf32>
    %38 = vector.shape_cast %37 : vector<128xf32> to vector<128x1xf32>
    %39 = vector.broadcast %38 : vector<128x1xf32> to vector<128x128xf32>
    %40 = arith.subf %36, %39 : vector<128x128xf32>
    %41 = math.exp %40 : vector<128x128xf32>
    %cst_28 = arith.constant dense<0.000000e+00> : vector<128xf32>
    %42 = vector.multi_reduction <add>, %41, %cst_28 [1] : vector<128x128xf32> to vector<128xf32>
    %43 = vector.shape_cast %42 : vector<128xf32> to vector<128x1xf32>
    %44 = tpu.reciprocal %43 {approx = true} : vector<128x1xf32> -> vector<128x1xf32>
    %45 = vector.broadcast %44 : vector<128x1xf32> to vector<128x128xf32>
    %46 = arith.mulf %41, %45 : vector<128x128xf32>
    %47 = arith.truncf %46 : vector<128x128xf32> to vector<128x128xbf16>
    %cst_29 = arith.constant dense<0.000000e+00> : vector<128x128xf32>
    %48 = tpu.matmul %47, %22, %cst_29 {dimension_numbers = #tpu.dot_dimension_numbers<[1], [0], [0], [1], [0, 0, 1, 1], [], []>} : vector<128x128xbf16>, vector<128x128xbf16>, vector<128x128xf32> -> vector<128x128xf32>
    %49 = arith.truncf %48 : vector<128x128xf32> to vector<128x128xbf16>
    %c0_30 = arith.constant 0 : index
    %c0_31 = arith.constant 0 : index
    %50 = vector.load %arg12[%c0_30, %c0_31] : memref<128x128xbf16, #tpu.memory_space<vmem>>, vector<128x128xbf16>
    %cst_32 = arith.constant dense<0.000000e+00> : vector<128x128xf32>
    %51 = tpu.matmul %49, %50, %cst_32 {dimension_numbers = #tpu.dot_dimension_numbers<[1], [0], [0], [1], [0, 0, 1, 1], [], []>} : vector<128x128xbf16>, vector<128x128xbf16>, vector<128x128xf32> -> vector<128x128xf32>
    %c0_33 = arith.constant 0 : index
    %c0_34 = arith.constant 0 : index
    %52 = vector.load %arg13[%c0_33, %c0_34] : memref<1x128xf32, #tpu.memory_space<vmem>>, vector<1x128xf32>
    %53 = vector.broadcast %52 : vector<1x128xf32> to vector<128x128xf32>
    %54 = arith.addf %51, %53 : vector<128x128xf32>
    %55 = arith.addf %54, %10 : vector<128x128xf32>
    %56 = arith.truncf %55 : vector<128x128xf32> to vector<128x128xbf16>
    %c0_35 = arith.constant 0 : index
    %c0_36 = arith.constant 0 : index
    %57 = vector.load %arg14[%c0_35, %c0_36] : memref<128x128xbf16, #tpu.memory_space<vmem>>, vector<128x128xbf16>
    %cst_37 = arith.constant dense<0.000000e+00> : vector<128x128xf32>
    %58 = tpu.matmul %56, %57, %cst_37 {dimension_numbers = #tpu.dot_dimension_numbers<[1], [0], [0], [1], [0, 0, 1, 1], [], []>} : vector<128x128xbf16>, vector<128x128xbf16>, vector<128x128xf32> -> vector<128x128xf32>
    %c0_38 = arith.constant 0 : index
    %c0_39 = arith.constant 0 : index
    %59 = vector.load %arg15[%c0_38, %c0_39] : memref<1x128xf32, #tpu.memory_space<vmem>>, vector<1x128xf32>
    %60 = vector.broadcast %59 : vector<1x128xf32> to vector<128x128xf32>
    %61 = arith.addf %58, %60 : vector<128x128xf32>
    %c0_40 = arith.constant 0 : index
    %c0_41 = arith.constant 0 : index
    %c0_42 = arith.constant 0 : index
    %62 = vector.load %arg16[%c0_40, %c0_41, %c0_42] : memref<1x128x128xf32, #tpu.memory_space<vmem>>, vector<1x128x128xf32>
    %63 = vector.shape_cast %62 : vector<1x128x128xf32> to vector<128x128xf32>
    %64 = vector.shape_cast %61 : vector<128x128xf32> to vector<1x128x128xf32>
    tpu.vector_store %arg16[%c0_40, %c0_41, %c0_42], %64 {strides = array<i32>} : memref<1x128x128xf32, #tpu.memory_space<vmem>>, vector<1x128x128xf32>,
    return
  }
  func.func @transform_0(%arg0: i32, %arg1: i32) -> (i32, i32, i32) {
    %c0_i32 = arith.constant 0 : i32
    %c0_i32_0 = arith.constant 0 : i32
    return %arg0, %arg1, %c0_i32 : i32, i32, i32
  }
  func.func @transform_1(%arg0: i32, %arg1: i32) -> (i32, i32, i32) {
    %c0_i32 = arith.constant 0 : i32
    %c0_i32_0 = arith.constant 0 : i32
    %c0_i32_1 = arith.constant 0 : i32
    return %arg0, %c0_i32, %c0_i32_0 : i32, i32, i32
  }
  func.func @transform_2(%arg0: i32, %arg1: i32) -> (i32, i32, i32) {
    %c0_i32 = arith.constant 0 : i32
    %c0_i32_0 = arith.constant 0 : i32
    %c0_i32_1 = arith.constant 0 : i32
    return %arg0, %c0_i32, %c0_i32_0 : i32, i32, i32
  }
  func.func @transform_3(%arg0: i32, %arg1: i32) -> (i32, i32) {
    %c0_i32 = arith.constant 0 : i32
    %c0_i32_0 = arith.constant 0 : i32
    %c0_i32_1 = arith.constant 0 : i32
    return %c0_i32, %c0_i32_0 : i32, i32
  }
  func.func @transform_4(%arg0: i32, %arg1: i32) -> (i32, i32) {
    %c0_i32 = arith.constant 0 : i32
    %c0_i32_0 = arith.constant 0 : i32
    %c0_i32_1 = arith.constant 0 : i32
    return %c0_i32, %c0_i32_0 : i32, i32
  }
  func.func @transform_5(%arg0: i32, %arg1: i32) -> (i32, i32) {
    %c0_i32 = arith.constant 0 : i32
    %c0_i32_0 = arith.constant 0 : i32
    %c0_i32_1 = arith.constant 0 : i32
    return %c0_i32, %c0_i32_0 : i32, i32
  }
  func.func @transform_6(%arg0: i32, %arg1: i32) -> (i32, i32) {
    %c0_i32 = arith.constant 0 : i32
    %c0_i32_0 = arith.constant 0 : i32
    %c0_i32_1 = arith.constant 0 : i32
    return %c0_i32, %c0_i32_0 : i32, i32
  }
  func.func @transform_7(%arg0: i32, %arg1: i32) -> (i32, i32) {
    %c0_i32 = arith.constant 0 : i32
    %c0_i32_0 = arith.constant 0 : i32
    %c0_i32_1 = arith.constant 0 : i32
    return %c0_i32, %c0_i32_0 : i32, i32
  }
  func.func @transform_8(%arg0: i32, %arg1: i32) -> (i32, i32) {
    %c0_i32 = arith.constant 0 : i32
    %c0_i32_0 = arith.constant 0 : i32
    %c0_i32_1 = arith.constant 0 : i32
    return %c0_i32, %c0_i32_0 : i32, i32
  }
  func.func @transform_9(%arg0: i32, %arg1: i32) -> (i32, i32) {
    %c0_i32 = arith.constant 0 : i32
    %c0_i32_0 = arith.constant 0 : i32
    %c0_i32_1 = arith.constant 0 : i32
    return %c0_i32, %c0_i32_0 : i32, i32
  }
  func.func @transform_10(%arg0: i32, %arg1: i32) -> (i32, i32) {
    %c0_i32 = arith.constant 0 : i32
    %c0_i32_0 = arith.constant 0 : i32
    %c0_i32_1 = arith.constant 0 : i32
    return %c0_i32, %c0_i32_0 : i32, i32
  }
  func.func @transform_11(%arg0: i32, %arg1: i32) -> (i32, i32) {
    %c0_i32 = arith.constant 0 : i32
    %c0_i32_0 = arith.constant 0 : i32
    %c0_i32_1 = arith.constant 0 : i32
    return %c0_i32, %c0_i32_0 : i32, i32
  }
  func.func @transform_12(%arg0: i32, %arg1: i32) -> (i32, i32) {
    %c0_i32 = arith.constant 0 : i32
    %c0_i32_0 = arith.constant 0 : i32
    %c0_i32_1 = arith.constant 0 : i32
    return %c0_i32, %c0_i32_0 : i32, i32
  }
  func.func @transform_13(%arg0: i32, %arg1: i32) -> (i32, i32) {
    %c0_i32 = arith.constant 0 : i32
    %c0_i32_0 = arith.constant 0 : i32
    %c0_i32_1 = arith.constant 0 : i32
    return %c0_i32, %c0_i32_0 : i32, i32
  }
  func.func @transform_14(%arg0: i32, %arg1: i32) -> (i32, i32, i32) {
    %c0_i32 = arith.constant 0 : i32
    %c0_i32_0 = arith.constant 0 : i32
    return %arg0, %arg1, %c0_i32 : i32, i32, i32
  }
}

</mosaic_0001>

<bundles_post_ra>
// kernel: wplus_adapter_forward.3
= control target key start
LH: loop header
LB: loop body
LE: loop exit
PB: predicated region body
PF: predicated region fallthrough
CT: control target
= control target key end

     0   :  { %8 = vsyncpa [#allocation3], 0  ;;  %s148_s12 = smov [#allocation2]   ;;  %s185_s0 = inlined_call_operand.vmem [shape: bf16[8,32], index: 0, kind: input, shape index: {}]   ;;  %s186_s1 = inlined_call_operand.hbm [shape: bf16[32,128], index: 1, kind: input, shape index: {}]   ;;  %s187_s2 = inlined_call_operand.vmem [shape: f32[1,128], index: 2, kind: input, shape index: {}]   ;;  %s188_s3 = inlined_call_operand.vmem [shape: bf16[8,128], index: 3, kind: output, shape index: {}]  }
   0x1   :  { %s16_s13 = sshll.u32 %s148_s12, 4  ;;  %s17_s13 = int_to_ptr.vmem [resolvable:$true] %s16_s13 }
   0x2   :  { %s134_s14 = scalar_lea.vmem %s17_s13, 256  ;;  %p139_p1 = scmp.lt.s32.totalorder %s17_s13, %s17_s13 }
   0x3   :  { %p135_p0 = scmp.ne.s32.totalorder %s17_s13, %s134_s14  ;;  %p140_p2 = scmp.lt.s32.totalorder %s134_s14, %s134_s14 }
   0x5   :  { %p141_p3 = por %p140_p2, %p139_p1 }
   0x7   :  { %p142_p4 = pnand %p141_p3, %p135_p0 }
   0x9   :  { %145 = shalt.err (!%p142_p4)
}
   0xa   :  { %s149_s15 = smov 64   ;;  %s150_s16 = smov 4  }
   0xb   :  { %22 = dma.hbm_to_vmem [thread:$0]  %s186_s1, 256, %s17_s13, [#allocation3], %s149_s15, %s149_s15, %s150_s16  }
   0xc   :  { %146 = dma.done.wait [#allocation3], 256  }
   0xd   :  { %147 = vsyncadd [#allocation3], 4294967040  ;;  %v151_v0 = vmov 0.0   ;;  %vm152_vm0 = vmmov 0   ;;  %v124_v1 = vld [vmem:[#allocation2 + $0x8] sm:$0xff]   ;;  %v125_v2 = vld [vmem:[#allocation2] sm:$0xff]  }
   0xe   :  { %111 = vmatprep.subr.bf16.mxu0 %v151_v0  ;;  %115 = vmatprep.mubr.msk.bf16.mxu0 %vm152_vm0, %v151_v0  ;;  %v29_v3 = vld [vmem:[%s185_s0] sm:$0xf]  ;;  %vm53_vm1 = vcmask 261120  }
   0xf   :  { %112 = vmatpush3.bf16.msra.mxu0 %v124_v1  ;;  %v104_v4 = vld [vmem:[%s187_s2] ss:$0 sm:$0xff] }
  0x10   :  { %113 = vmatprep.subr.bf16.mxu0 %v151_v0 }
  0x13   :  { %114 = vmatpush3.bf16.msra.mxu0 %v125_v2 }
  0x16   :  { %116 = vmatmul.mubr.msk.bf16.vlgmr.msra.gmra.mxu0 %vm53_vm1, %v29_v3 }
  0xd6   :  { %v91_v5 = vpop.f32.mrf.mxu0 }
  0xd7   :  { %v92_v6 = vadd.f32 %v104_v4, %v91_v5 }
  0xd8   :  { %v117_v7 = vpop.f32.mrf.mxu0 }
  0xd9   :  { %v97_v8 = vpack.c.bf16 %v92_v6, %v92_v6 }
  0xda   :  { %v94_v9 = vpop.f32.mrf.mxu0 }
  0xdb   :  { %98 = vst [vmem:[%s188_s3] sm:$0xf] %v97_v8 }
  0xdc   :  { %v118_v10 = vpop.f32.mrf.mxu0 }
  0xdd   :  { %103 = vsyncpa [#allocation3], 1 }

// kernel: wplus_adapter_forward.4
= control target key start
LH: loop header
LB: loop body
LE: loop exit
PB: predicated region body
PF: predicated region fallthrough
CT: control target
= control target key end

     0   :  { %8 = vsyncpa [#allocation3], 0  ;;  %s294_s0 = inlined_call_operand.vmem [shape: bf16[2,128], index: 0, kind: input, shape index: {}]   ;;  %s295_s1 = inlined_call_operand.hbm [shape: bf16[128,128], index: 1, kind: input, shape index: {}]   ;;  %s296_s2 = inlined_call_operand.hbm [shape: f32[1,128], index: 2, kind: input, shape index: {}]   ;;  %s297_s3 = inlined_call_operand.vmem [shape: f32[2,128], index: 3, kind: output, shape index: {}]  }
   0x1   :  { %9 = vsyncpa [#allocation5], 0  ;;  %s256_s12 = smov [#allocation2]  }
   0x2   :  { %s17_s13 = sshll.u32 %s256_s12, 4  ;;  %s18_s13 = int_to_ptr.vmem [resolvable:$true] %s17_s13 }
   0x3   :  { %s220_s14 = scalar_lea.vmem %s18_s13, 1024  ;;  %p225_p1 = scmp.lt.s32.totalorder %s18_s13, %s18_s13 }
   0x4   :  { %p221_p0 = scmp.ne.s32.totalorder %s18_s13, %s220_s14  ;;  %p226_p2 = scmp.lt.s32.totalorder %s220_s14, %s220_s14 }
   0x6   :  { %p227_p3 = por %p226_p2, %p225_p1 }
   0x8   :  { %p228_p4 = pnand %p227_p3, %p221_p0 }
   0xa   :  { %231 = shalt.err (!%p228_p4)
}
   0xb   :  { %s257_s15 = smov 64   ;;  %s258_s16 = smov 4  }
   0xc   :  { %23 = dma.hbm_to_vmem [thread:$0]  %s295_s1, 1024, %s18_s13, [#allocation3], %s257_s15, %s257_s15, %s258_s16  }
   0xd   :  { %s259_s19 = smov [#allocation4]  }
   0xe   :  { %s30_s20 = sshll.u32 %s259_s19, 4  ;;  %s31_s20 = int_to_ptr.vmem [resolvable:$true] %s30_s20 }
   0xf   :  { %s240_s21 = scalar_lea.vmem %s31_s20, 16  ;;  %s244_s22 = scalar_lea.vmem %s31_s20, 32 }
  0x10   :  { %p241_p5 = scmp.ne.s32.totalorder %s31_s20, %s240_s21  ;;  %p245_p6 = scmp.lt.s32.totalorder %s31_s20, %s31_s20 }
  0x11   :  { %p246_p7 = scmp.lt.s32.totalorder %s244_s22, %s240_s21 }
  0x13   :  { %p247_p8 = por %p246_p7, %p245_p6 }
  0x15   :  { %p248_p9 = pnand %p247_p8, %p241_p5 }
  0x17   :  { %251 = shalt.err (!%p248_p9)
}
  0x18   :  { %33 = dma.hbm_to_vmem [thread:$0]  %s296_s2, 16, %s31_s20, [#allocation5]  }
  0x19   :  { %252 = dma.done.wait [#allocation3], 1024  }
  0x1a   :  { %253 = vsyncadd [#allocation3], 4294966272 }
  0x1b   :  { %254 = dma.done.wait [#allocation5], 16  }
  0x1c   :  { %255 = vsyncadd [#allocation5], 4294967280  ;;  %v260_v0 = vmov 0.0   ;;  %vm261_vm0 = vmmov 0   ;;  %v204_v1 = vld [vmem:[#allocation2 + $0x38] sm:$0xff]   ;;  %v205_v2 = vld [vmem:[#allocation2 + $0x30] sm:$0xff]  }
  0x1d   :  { %178 = vmatprep.subr.bf16.mxu0 %v260_v0  ;;  %194 = vmatprep.mubr.msk.bf16.mxu0 %vm261_vm0, %v260_v0  ;;  %v206_v3 = vld [vmem:[#allocation2 + $0x28] sm:$0xff]   ;;  %v207_v4 = vld [vmem:[#allocation2 + $0x20] sm:$0xff]   ;;  %v208_v5 = vld [vmem:[#allocation2 + $0x18] sm:$0xff]  }
  0x1e   :  { %179 = vmatpush3.bf16.msra.mxu0 %v204_v1  ;;  %v209_v6 = vld [vmem:[#allocation2 + $0x10] sm:$0xff]   ;;  %v210_v7 = vld [vmem:[#allocation2 + $0x8] sm:$0xff]   ;;  %v211_v8 = vld [vmem:[#allocation2] sm:$0xff]  }
  0x1f   :  { %180 = vmatprep.subr.bf16.mxu0 %v260_v0  ;;  %v41_v9 = vld [vmem:[%s294_s0] sm:$0x1] }
  0x20   :  { %v160_v10 = vld [vmem:[#allocation4] ss:$0 sm:$0xff] }
  0x22   :  { %181 = vmatpush3.bf16.msra.mxu0 %v205_v2 }
  0x23   :  { %182 = vmatprep.subr.bf16.mxu0 %v260_v0 }
  0x26   :  { %183 = vmatpush3.bf16.msra.mxu0 %v206_v3 }
  0x27   :  { %184 = vmatprep.subr.bf16.mxu0 %v260_v0 }
  0x2a   :  { %185 = vmatpush3.bf16.msra.mxu0 %v207_v4 }
  0x2b   :  { %186 = vmatprep.subr.bf16.mxu0 %v260_v0 }
  0x2e   :  { %187 = vmatpush3.bf16.msra.mxu0 %v208_v5 }
  0x2f   :  { %188 = vmatprep.subr.bf16.mxu0 %v260_v0 }
  0x32   :  { %189 = vmatpush3.bf16.msra.mxu0 %v209_v6 }
  0x33   :  { %190 = vmatprep.subr.bf16.mxu0 %v260_v0 }
  0x36   :  { %191 = vmatpush3.bf16.msra.mxu0 %v210_v7 }
  0x37   :  { %192 = vmatprep.subr.bf16.mxu0 %v260_v0 }
  0x3a   :  { %193 = vmatpush3.bf16.msra.mxu0 %v211_v8 }
  0x3d   :  { %195 = vmatmul.mubr.bf16.vlgmr.msra.gmra.mxu0 %v41_v9 }
  0xfd   :  { %v147_v11 = vpop.f32.mrf.mxu0 }
  0xfe   :  { %v148_v12 = vadd.f32 %v160_v10, %v147_v11 }
  0xff   :  { %v196_v13 = vpop.f32.mrf.mxu0 }
 0x100   :  { %153 = vst [vmem:[%s297_s3] sm:$0x3] %v148_v12 }
 0x101   :  { %v150_v14 = vpop.f32.mrf.mxu0 }
 0x103   :  { %v197_v15 = vpop.f32.mrf.mxu0 }
 0x104   :  { %158 = vsyncpa [#allocation3], 1 }
 0x105   :  { %159 = vsyncpa [#allocation5], 1 }

// kernel: wplus_adapter_forward.5
= control target key start
LH: loop header
LB: loop body
LE: loop exit
PB: predicated region body
PF: predicated region fallthrough
CT: control target
= control target key end

     0   :  { %s2829_s29 = smov 0   ;;  %s2831_s30 = smov 0   ;;  %s3383_s0 = inlined_call_operand.vmem [shape: bf16[2,256,128], index: 0, kind: input, shape index: {}]   ;;  %s3384_s1 = inlined_call_operand.vmem [shape: f32[2,1,128], index: 1, kind: input, shape index: {}]   ;;  %s3385_s2 = inlined_call_operand.vmem [shape: bf16[2,128,128], index: 2, kind: input, shape index: {}]   ;;  %s3386_s3 = inlined_call_operand.vmem [shape: f32[1,128], index: 3, kind: input, shape index: {}]   ;;  %s3387_s4 = inlined_call_operand.vmem [shape: bf16[128,128], index: 4, kind: input, shape index: {}]   ;;  %s3388_s5 = inlined_call_operand.vmem [shape: f32[1,128], index: 5, kind: input, shape index: {}]   ;;  %s3389_s6 = inlined_call_operand.vmem [shape: bf16[128,128], index: 6, kind: input, shape index: {}]   ;;  %s3390_s7 = inlined_call_operand.vmem [shape: f32[1,128], index: 7, kind: input, shape index: {}]   ;;  %s3391_s8 = inlined_call_operand.vmem [shape: bf16[128,256], index: 8, kind: input, shape index: {}]   ;;  %s3392_s9 = inlined_call_operand.vmem [shape: f32[1,256], index: 9, kind: input, shape index: {}]   ;;  %s3393_s10 = inlined_call_operand.vmem [shape: bf16[128,128], index: 10, kind: input, shape index: {}]   ;;  %s3394_s11 = inlined_call_operand.vmem [shape: f32[1,128], index: 11, kind: input, shape index: {}]   ;;  %s3395_s12 = inlined_call_operand.vmem [shape: bf16[128,128], index: 12, kind: input, shape index: {}]   ;;  %s3396_s13 = inlined_call_operand.vmem [shape: f32[1,128], index: 13, kind: input, shape index: {}]   ;;  %s3397_s14 = inlined_call_operand.vmem [shape: f32[2,256,128], index: 14, kind: output, shape index: {}]  }
   0x1   :  { %s2833_s15 = smov 0   ;;  %s2835_s16 = smov 0  }
   0x2   :  { %s2837_s17 = smov 0  }
   0x3 LB: > { %3399 = sst [smem:[#allocation2_spill]] %s2747_s16  ;;  %s33_s18 = sadd.s32 1, %s2743_s15  ;;  %s2751_s17 = sphi %s2837_s17, %s24_s17   ;;  %s2747_s16 = sphi %s2835_s16, %s3405_s16   ;;  %s2743_s15 = sphi %s2833_s15, %s3407_s15   ;;  %s2739_s30 = sphi %s2831_s30, %s3403_s30   ;;  %s2735_s29 = sphi %s2829_s29, %s3406_s29  }
   0x4   : > { %s36_s19 = sadd.s32 1, %s2747_s16  ;;  %p34_p0 = scmp.ge.s32.totalorder %s33_s18, 2 }
   0x5   : > { %p2166_p1 = scmp.ge.s32.totalorder %s2751_s17, 1  ;;  %p451_p2 = scmp.lt.s32.totalorder %s2751_s17, 5 }
   0x6   : > { %s3409_s18 = smov (%p34_p0, %s33_s18), 0  ;;  %s3411_s19 = smov (!%p34_p0, %s36_s19), %s2747_s16 }
   0x7   : > { %3400 = sst [smem:[#allocation3_spill]] %s3409_s18  ;;  %p452_p3 = pnand %p2166_p1, %p451_p2 }
   0x8   : > { %p38_p4 = scmp.ge.s32.totalorder %s3411_s19, 2  ;;  %s2167_s22 = sshll.u32 (!%p452_p3), %s2735_s29, 4 }
   0x9   : > { %455 = sbr.rel (%p452_p3) target bundleno = 1611 (0x64b), region = 76  ;;  %p514_p5 = scmp.lt.s32.totalorder (!%p452_p3), %s2739_s30, 1 }
   0xa   : > { %s3413_s19 = smov (%p38_p4, %s3411_s19), 0  ;;  %p2868_p6 = scmp.lt.s32.totalorder (!%p452_p3), %s2167_s22, 31 }
   0xb   : > { %3401 = sst [smem:[#allocation4_spill]] %s3413_s19 }
   0xe   : > { %v2577_v0 = vld [vmem:[%s3387_s4 + $0x38] sm:$0xff]   ;;  %v2581_v3 = vld [vmem:[%s3387_s4 + $0x30] sm:$0xff]   ;;  %s3415_s30 = smov (!%p514_p5, %s2739_s30), 1  ;;  %v2582_v4 = vld [vmem:[%s3391_s8 + $0x64] ss:$8 sps:$4 sm:$0xff]   ;;  %v2753_v6 = vmov 0   ;;  %v839_v49 = vlaneseq }
   0xf   : > { %v2578_v1 = vld [vmem:[%s3391_s8 + $0x74] ss:$8 sps:$4 sm:$0xff]   ;;  %2344 = vmatprep.subr.bf16.mxu0 %v2577_v0  ;;  %v2580_v2 = vld [vmem:[%s3391_s8 + $0x70] ss:$8 sps:$4 sm:$0xff]   ;;  %v2584_v5 = vld [vmem:[%s3391_s8 + $0x60] ss:$8 sps:$4 sm:$0xff]   ;;  %1009 = vmatprep.mubr.bf16.mxu1 %v2753_v6 }
  0x10   : > { %977 = vmatprep.subr.bf16.mxu1 %v2578_v1  ;;  %2345 = vmatpush3.bf16.msra.mxu0 %v2577_v0  ;;  %v2585_v7 = vld [vmem:[%s3387_s4 + $0x28] sm:$0xff]   ;;  %v2586_v8 = vld [vmem:[%s3391_s8 + $0x54] ss:$8 sps:$4 sm:$0xff]   ;;  %v2588_v9 = vld [vmem:[%s3391_s8 + $0x50] ss:$8 sps:$4 sm:$0xff]   ;;  %s3417_s22 = smov (!%p2868_p6, %s2167_s22), 31 }
  0x11   : > { %978 = vmatpush1.bf16.msra.mxu1 %v2580_v2  ;;  %2346 = vmatprep.subr.bf16.mxu0 %v2581_v3  ;;  %s2168_s21 = sshll.u32 %s3415_s30, 5  ;;  %v2589_v10 = vld [vmem:[%s3387_s4 + $0x20] sm:$0xff]   ;;  %v2593_v13 = vld [vmem:[%s3387_s4 + $0x18] sm:$0xff]   ;;  %v2597_v16 = vld [vmem:[%s3387_s4 + $0x10] sm:$0xff]   ;;  %s2247_s23 = sshll.u32 %s3415_s30, 6  ;;  %v840_v50 = vshrl.u32 %v839_v49, 7 }
  0x12   : > { %979 = vmatprep.subr.bf16.mxu1 %v2582_v4  ;;  %v2590_v11 = vld [vmem:[%s3391_s8 + $0x44] ss:$8 sps:$4 sm:$0xff]   ;;  %s2905_s28 = sadd.s32 %s2168_s21, %s3417_s22  ;;  %v2592_v12 = vld [vmem:[%s3391_s8 + $0x40] ss:$8 sps:$4 sm:$0xff]   ;;  %v2594_v14 = vld [vmem:[%s3391_s8 + $0x34] ss:$8 sps:$4 sm:$0xff]   ;;  %s2939_s16 = scalar_lea.vmem %s3385_s2, %s2247_s23 }
  0x13   : > { %s2169_s26 = sshll.u32 %s2905_s28, 2  ;;  %v2596_v15 = vld [vmem:[%s3391_s8 + $0x30] ss:$8 sps:$4 sm:$0xff]   ;;  %v2598_v17 = vld [vmem:[%s3391_s8 + $0x24] ss:$8 sps:$4 sm:$0xff]   ;;  %v841_v51 = vsub.s32 0, %v840_v50 }
  0x14   : > { %2347 = vmatpush3.bf16.msra.mxu0 %v2581_v3  ;;  %s2926_s29 = scalar_lea.vmem %s3383_s0, %s2169_s26  ;;  %v2600_v18 = vld [vmem:[%s3391_s8 + $0x20] ss:$8 sps:$4 sm:$0xff]   ;;  %v2602_v21 = vld [vmem:[%s3391_s8 + $0x14] ss:$8 sps:$4 sm:$0xff]   ;;  %v2604_v22 = vld [vmem:[%s3391_s8 + $0x10] ss:$8 sps:$4 sm:$0xff]  }
  0x15   : > { %980 = vmatpush1.bf16.msra.mxu1 %v2584_v5  ;;  %2348 = vmatprep.subr.bf16.mxu0 %v2585_v7  ;;  %v2609_v19 = vld [vmem:[%s2926_s29] sm:$0xff]   ;;  %v2601_v20 = vld [vmem:[%s3387_s4 + $0x8] sm:$0xff]   ;;  %v2612_v28 = vld [vmem:[%s2926_s29 + $0x10] sm:$0xff]   ;;  %v845_v54 = vsub.s32 1, %v840_v50 }
  0x16   : > { %981 = vmatprep.subr.bf16.mxu1 %v2586_v8  ;;  %2360 = vmatprep.mubr.bf16.mxu0 %v2609_v19  ;;  %v2605_v23 = vld [vmem:[%s3387_s4] sm:$0xff]   ;;  %v2610_v26 = vld [vmem:[%s2926_s29 + $0x8] sm:$0xff]   ;;  %v2625_v29 = vld [vmem:[%s3389_s6 + $0x38] sm:$0xff]  }
  0x17   : > { %v2606_v24 = vld [vmem:[%s3391_s8 + $0x4] ss:$8 sps:$4 sm:$0xff]   ;;  %v2608_v25 = vld [vmem:[%s3391_s8] ss:$8 sps:$4 sm:$0xff]   ;;  %v2613_v30 = vld [vmem:[%s2926_s29 + $0x18] sm:$0xff]  }
  0x18   : > { %2349 = vmatpush3.bf16.msra.mxu0 %v2585_v7  ;;  %v2611_v27 = vld [vmem:[%s2939_s16] sm:$0xff]   ;;  %v2626_v31 = vld [vmem:[%s3389_s6 + $0x30] sm:$0xff]   ;;  %v2614_v32 = vld [vmem:[%s2939_s16 + $0x8] sm:$0xff]  }
  0x19   : > { %982 = vmatpush1.bf16.msra.mxu1 %v2588_v9  ;;  %2350 = vmatprep.subr.bf16.mxu0 %v2589_v10  ;;  %v2615_v33 = vld [vmem:[%s2926_s29 + $0x20] sm:$0xff]   ;;  %v2627_v34 = vld [vmem:[%s3389_s6 + $0x28] sm:$0xff]   ;;  %v2617_v37 = vld [vmem:[%s2939_s16 + $0x10] sm:$0xff]  }
  0x1a   : > { %983 = vmatprep.subr.bf16.mxu1 %v2590_v11  ;;  %v2628_v35 = vld [vmem:[%s3389_s6 + $0x20] sm:$0xff]   ;;  %v2616_v36 = vld [vmem:[%s2926_s29 + $0x28] sm:$0xff]   ;;  %v2618_v38 = vld [vmem:[%s2926_s29 + $0x30] sm:$0xff]  }
  0x1b   : > { %v2629_v39 = vld [vmem:[%s3389_s6 + $0x18] sm:$0xff]   ;;  %v2621_v42 = vld [vmem:[%s2939_s16 + $0x20] sm:$0xff]   ;;  %v2622_v43 = vld [vmem:[%s2939_s16 + $0x28] sm:$0xff]  }
  0x1c   : > { %2351 = vmatpush3.bf16.msra.mxu0 %v2589_v10  ;;  %v2619_v40 = vld [vmem:[%s2926_s29 + $0x38] sm:$0xff]   ;;  %v2623_v44 = vld [vmem:[%s2939_s16 + $0x30] sm:$0xff]   ;;  %v2631_v47 = vld [vmem:[%s3389_s6 + $0x8] sm:$0xff]   ;;  %s525_s29 = scalar_lea.vmem %s3384_s1, %s3415_s30 }
  0x1d   : > { %984 = vmatpush1.bf16.msra.mxu1 %v2592_v12  ;;  %2352 = vmatprep.subr.bf16.mxu0 %v2593_v13  ;;  %v2620_v41 = vld [vmem:[%s2939_s16 + $0x18] sm:$0xff]   ;;  %v2630_v46 = vld [vmem:[%s3389_s6 + $0x10] sm:$0xff]   ;;  %v2632_v48 = vld [vmem:[%s3389_s6] sm:$0xff]  }
  0x1e   : > { %985 = vmatprep.subr.bf16.mxu1 %v2594_v14  ;;  %v2624_v45 = vld [vmem:[%s2939_s16 + $0x38] sm:$0xff]   ;;  %v837_v52 = vld [vmem:[%s3392_s9] sm:$0x3] }
  0x1f   : > { %v3008_v56 = vrot.slane %v837_v52, %v841_v51  ;;  %v3013_v58 = vld [vmem:[%s3388_s5] ss:$0 sm:$0xff]  ;;  %v3020_v61 = vrot.slane %v837_v52, %v845_v54 }
  0x20   : > { %2353 = vmatpush3.bf16.msra.mxu0 %v2593_v13 }
  0x21   : > { %986 = vmatpush1.bf16.msra.mxu1 %v2596_v15  ;;  %2354 = vmatprep.subr.bf16.mxu0 %v2597_v16 }
  0x22   : > { %987 = vmatprep.subr.bf16.mxu1 %v2598_v17 }
  0x24   : > { %2355 = vmatpush3.bf16.msra.mxu0 %v2597_v16 }
  0x25   : > { %988 = vmatpush1.bf16.msra.mxu1 %v2600_v18  ;;  %2356 = vmatprep.subr.bf16.mxu0 %v2601_v20 }
  0x26   : > { %989 = vmatprep.subr.bf16.mxu1 %v2602_v21 }
  0x28   : > { %2357 = vmatpush3.bf16.msra.mxu0 %v2601_v20 }
  0x29   : > { %990 = vmatpush1.bf16.msra.mxu1 %v2604_v22  ;;  %2358 = vmatprep.subr.bf16.mxu0 %v2605_v23 }
  0x2a   : > { %991 = vmatprep.subr.bf16.mxu1 %v2606_v24 }
  0x2c   : > { %2359 = vmatpush3.bf16.msra.mxu0 %v2605_v23 }
  0x2d   : > { %992 = vmatpush1.bf16.msra.mxu1 %v2608_v25  ;;  %2376 = vmatprep.subr.bf16.mxu0 %v2625_v29 }
  0x2f   : > { %2361 = vmatmul.mubr.bf16.vlgmr.msra.gmra.mxu0 %v2610_v26 }
  0x30   : > { %1010 = vmatmul.mubr.bf16.vlgmr.msra.gmra.mxu1 %v2611_v27  ;;  %2364 = vmatprep.mubr.bf16.mxu0 %v2612_v28 }
  0x31   : > { %1019 = vmatprep.mubr.bf16.mxu1 %v2753_v6  ;;  %2377 = vmatpush3.bf16.msra.mxu0 %v2625_v29 }
  0x32   : > { %2378 = vmatprep.subr.bf16.mxu0 %v2626_v31 }
  0x35   : > { %2379 = vmatpush3.bf16.msra.mxu0 %v2626_v31 }
  0x36   : > { %2380 = vmatprep.subr.bf16.mxu0 %v2627_v34 }
  0x37   : > { %2365 = vmatmul.mubr.bf16.gmra.mxu0 %v2613_v30 }
  0x38   : > { %1020 = vmatmul.mubr.bf16.gmra.mxu1 %v2614_v32  ;;  %2368 = vmatprep.mubr.bf16.mxu0 %v2615_v33 }
  0x39   : > { %1029 = vmatprep.mubr.bf16.mxu1 %v2753_v6  ;;  %2381 = vmatpush3.bf16.msra.mxu0 %v2627_v34 }
  0x3a   : > { %2382 = vmatprep.subr.bf16.mxu0 %v2628_v35 }
  0x3d   : > { %2383 = vmatpush3.bf16.msra.mxu0 %v2628_v35 }
  0x3e   : > { %2384 = vmatprep.subr.bf16.mxu0 %v2629_v39 }
  0x3f   : > { %2369 = vmatmul.mubr.bf16.gmra.mxu0 %v2616_v36 }
  0x40   : > { %1030 = vmatmul.mubr.bf16.gmra.mxu1 %v2617_v37  ;;  %2372 = vmatprep.mubr.bf16.mxu0 %v2618_v38 }
  0x41   : > { %1039 = vmatprep.mubr.bf16.mxu1 %v2753_v6  ;;  %2385 = vmatpush3.bf16.msra.mxu0 %v2629_v39 }
  0x42   : > { %2386 = vmatprep.subr.bf16.mxu0 %v2630_v46 }
  0x45   : > { %2387 = vmatpush3.bf16.msra.mxu0 %v2630_v46 }
  0x46   : > { %2388 = vmatprep.subr.bf16.mxu0 %v2631_v47 }
  0x47   : > { %2373 = vmatmul.mubr.bf16.gmra.mxu0 %v2619_v40 }
  0x48   : > { %1040 = vmatmul.mubr.bf16.gmra.mxu1 %v2620_v41 }
  0x49   : > { %1049 = vmatprep.mubr.bf16.mxu1 %v2753_v6  ;;  %2389 = vmatpush3.bf16.msra.mxu0 %v2631_v47 }
  0x4a   : > { %2390 = vmatprep.subr.bf16.mxu0 %v2632_v48 }
  0x4d   : > { %2391 = vmatpush3.bf16.msra.mxu0 %v2632_v48 }
  0x50   : > { %1050 = vmatmul.mubr.bf16.gmra.mxu1 %v2621_v42 }
  0x51   : > { %1059 = vmatprep.mubr.bf16.mxu1 %v2753_v6 }
  0x58   : > { %1060 = vmatmul.mubr.bf16.gmra.mxu1 %v2622_v43 }
  0x59   : > { %1069 = vmatprep.mubr.bf16.mxu1 %v2753_v6 }
  0x60   : > { %1070 = vmatmul.mubr.bf16.gmra.mxu1 %v2623_v44 }
  0x61   : > { %1079 = vmatprep.mubr.bf16.mxu1 %v2753_v6  ;;  %v3027_v6 = vld [vmem:[%s525_s29] ss:$0 sm:$0xff]  ;;  %s2174_s29 = sshll.u32 %s2905_s28, 3 }
  0x62   : > { %s3350_s22 = scalar_lea.vmem %s3397_s14, %s2174_s29 }
  0x68   : > { %1080 = vmatmul.mubr.bf16.gmra.mxu1 %v2624_v45 }
  0xef   : > { %v2362_v53 = vpop.f32.mrf.mxu0 }
  0xf0   : > { %v1011_v55 = vpop.f32.mrf.mxu1  ;;  %v720_v2 = vadd.f32 %v2362_v53, %v3013_v58 }
  0xf1   : > { %v711_v57 = vpop.f32.mrf.mxu0  ;;  %v1012_v60 = vadd.f32 %v1011_v55, %v3008_v56 }
  0xf2   : > { %v1013_v59 = vpop.f32.mrf.mxu1  ;;  %v712_v63 = vadd.f32 %v3013_v58, %v711_v57  ;;  %v3043_v16 = vadd.f32 %v3027_v6, %v720_v2 }
  0xf3   : > { %v2363_v62 = vpop.f32.mrf.mxu0  ;;  %v1014_v3 = vadd.f32 %v1013_v59, %v3020_v61 }
  0xf4   : > { %v723_v0 = vadd.f32 %v2363_v62, %v3013_v58  ;;  %v1015_v1 = vpop.f32.mrf.mxu1  ;;  %v3037_v13 = vadd.f32 %v3027_v6, %v712_v63 }
  0xf5   : > { %v1016_v4 = vadd.f32 %v1015_v1, %v3008_v56  ;;  %v714_v5 = vpop.f32.mrf.mxu0 }
  0xf6   : > { %v715_v7 = vadd.f32 %v3013_v58, %v714_v5  ;;  %v1017_v8 = vpop.f32.mrf.mxu1  ;;  %v3031_v9 = vadd.f32 %v3027_v6, %v723_v0 }
  0xf7   : > { %v3033_v10 = vpack.c.bf16 %v1016_v4, %v1012_v60  ;;  %v1018_v11 = vadd.f32 %v1017_v8, %v3020_v61  ;;  %v2366_v12 = vpop.f32.mrf.mxu0 }
  0xf8   : > { %v3040_v14 = vadd.f32 %v3027_v6, %v715_v7  ;;  %v1021_v15 = vpop.f32.mrf.mxu1  ;;  %v798_v21 = vpack.c.bf16 %v3031_v9, %v3043_v16  ;;  %v736_v27 = vadd.f32 %v2366_v12, %v3013_v58 }
  0xf9   : > { %v3045_v17 = vpack.c.bf16 %v1018_v11, %v1014_v3  ;;  %v727_v18 = vpop.f32.mrf.mxu0  ;;  %v1022_v22 = vadd.f32 %v1021_v15, %v3008_v56 }
  0xfa   : > { %v1023_v19 = vpop.f32.mrf.mxu1  ;;  %v797_v20 = vpack.c.bf16 %v3040_v14, %v3037_v13  ;;  %v728_v24 = vadd.f32 %v3013_v58, %v727_v18  ;;  %v3071_v40 = vadd.f32 %v3027_v6, %v736_v27 }
  0xfb   : > { %v2367_v23 = vpop.f32.mrf.mxu0  ;;  %v1024_v28 = vadd.f32 %v1023_v19, %v3020_v61 }
  0xfc   : > { %v739_v25 = vadd.f32 %v2367_v23, %v3013_v58  ;;  %v1025_v26 = vpop.f32.mrf.mxu1  ;;  %2392 = vmatprep.mubr.bf16.mxu0 %v797_v20  ;;  %v3065_v37 = vadd.f32 %v3027_v6, %v728_v24 }
  0xfd   : > { %v1026_v29 = vadd.f32 %v1025_v26, %v3008_v56  ;;  %v730_v30 = vpop.f32.mrf.mxu0  ;;  %2393 = vmatmul.mubr.bf16.vlgmr.msra.gmra.mxu0 %v798_v21 }
  0xfe   : > { %v731_v31 = vadd.f32 %v3013_v58, %v730_v30  ;;  %v1027_v32 = vpop.f32.mrf.mxu1  ;;  %v3059_v33 = vadd.f32 %v3027_v6, %v739_v25 }
  0xff   : > { %v3061_v34 = vpack.c.bf16 %v1026_v29, %v1022_v22  ;;  %v1028_v35 = vadd.f32 %v1027_v32, %v3020_v61  ;;  %v2370_v36 = vpop.f32.mrf.mxu0 }
 0x100   : > { %v3068_v38 = vadd.f32 %v3027_v6, %v731_v31  ;;  %v1031_v39 = vpop.f32.mrf.mxu1  ;;  %v800_v47 = vpack.c.bf16 %v3059_v33, %v3071_v40  ;;  %v752_v51 = vadd.f32 %v2370_v36, %v3013_v58 }
 0x101   : > { %v3073_v41 = vpack.c.bf16 %v1028_v35, %v1024_v28  ;;  %v743_v42 = vpop.f32.mrf.mxu0  ;;  %v1032_v45 = vadd.f32 %v1031_v39, %v3008_v56 }
 0x102   : > { %v3075_v43 = vpop.f32.mrf.mxu1  ;;  %v799_v44 = vpack.c.bf16 %v3068_v38, %v3065_v37  ;;  %v744_v48 = vadd.f32 %v3013_v58, %v743_v42  ;;  %v3103_v1 = vadd.f32 %v3027_v6, %v752_v51 }
 0x103   : > { %v2371_v46 = vpop.f32.mrf.mxu0 }
 0x104   : > { %v755_v49 = vadd.f32 %v2371_v46, %v3013_v58  ;;  %v1035_v50 = vpop.f32.mrf.mxu1  ;;  %2396 = vmatprep.mubr.bf16.mxu0 %v799_v44  ;;  %v3095_v62 = vadd.f32 %v3027_v6, %v744_v48 }
 0x105   : > { %v1036_v52 = vadd.f32 %v1035_v50, %v3008_v56  ;;  %v746_v53 = vpop.f32.mrf.mxu0  ;;  %2397 = vmatmul.mubr.bf16.gmra.mxu0 %v800_v47 }
 0x106   : > { %v747_v54 = vadd.f32 %v3013_v58, %v746_v53  ;;  %v3087_v55 = vpop.f32.mrf.mxu1  ;;  %v3090_v57 = vadd.f32 %v3027_v6, %v755_v49 }
 0x107   : > { %v3092_v59 = vpack.c.bf16 %v1036_v52, %v1032_v45  ;;  %v2374_v60 = vpop.f32.mrf.mxu0 }
 0x108   : > { %v3098_v63 = vadd.f32 %v3027_v6, %v747_v54  ;;  %v3100_v0 = vpop.f32.mrf.mxu1  ;;  %v802_v7 = vpack.c.bf16 %v3090_v57, %v3103_v1  ;;  %v768_v15 = vadd.f32 %v2374_v60, %v3013_v58 }
 0x109   : > { %v759_v2 = vpop.f32.mrf.mxu0 }
 0x10a   : > { %v3105_v3 = vpop.f32.mrf.mxu1  ;;  %v801_v4 = vpack.c.bf16 %v3098_v63, %v3095_v62  ;;  %v760_v8 = vadd.f32 %v3013_v58, %v759_v2  ;;  %v3127_v25 = vadd.f32 %v3027_v6, %v768_v15 }
 0x10b   : > { %v2375_v5 = vpop.f32.mrf.mxu0 }
 0x10c   : > { %v771_v11 = vadd.f32 %v2375_v5, %v3013_v58  ;;  %v3113_v12 = vpop.f32.mrf.mxu1  ;;  %2400 = vmatprep.mubr.bf16.mxu0 %v801_v4  ;;  %v3121_v22 = vadd.f32 %v3027_v6, %v760_v8 }
 0x10d   : > { %v762_v18 = vpop.f32.mrf.mxu0  ;;  %2401 = vmatmul.mubr.bf16.gmra.mxu0 %v802_v7 }
 0x10e   : > { %v763_v19 = vadd.f32 %v3013_v58, %v762_v18  ;;  %v1047_v20 = vpop.f32.mrf.mxu1  ;;  %v3118_v21 = vadd.f32 %v3027_v6, %v771_v11 }
 0x110   : > { %v3124_v23 = vadd.f32 %v3027_v6, %v763_v19  ;;  %v1051_v24 = vpop.f32.mrf.mxu1  ;;  %v804_v58 = vpack.c.bf16 %v3118_v21, %v3127_v25 }
 0x112   : > { %v1053_v26 = vpop.f32.mrf.mxu1  ;;  %v803_v27 = vpack.c.bf16 %v3124_v23, %v3121_v22 }
 0x113   : > { %v1054_v19 = vadd.f32 %v1053_v26, %v3020_v61  ;;  %v1034_v26 = vadd.f32 %v3075_v43, %v3020_v61 }
 0x114   : > { %v1055_v28 = vpop.f32.mrf.mxu1  ;;  %2404 = vmatprep.mubr.bf16.mxu0 %v803_v27 }
 0x115   : > { %2405 = vmatmul.mubr.bf16.gmra.mxu0 %v804_v58 }
 0x116   : > { %v1057_v29 = vpop.f32.mrf.mxu1 }
 0x117   : > { %v1058_v27 = vadd.f32 %v1057_v29, %v3020_v61  ;;  %v1038_v29 = vadd.f32 %v3087_v55, %v3020_v61 }
 0x118   : > { %v1061_v30 = vpop.f32.mrf.mxu1 }
 0x119   : > { %v1062_v15 = vadd.f32 %v1061_v30, %v3008_v56  ;;  %v1052_v30 = vadd.f32 %v1051_v24, %v3008_v56  ;;  %v1042_v24 = vadd.f32 %v3100_v0, %v3008_v56 }
 0x11a   : > { %v1063_v31 = vpop.f32.mrf.mxu1 }
 0x11b   : > { %v1064_v5 = vadd.f32 %v1063_v31, %v3020_v61 }
 0x11c   : > { %v1065_v32 = vpop.f32.mrf.mxu1 }
 0x11d   : > { %v1066_v18 = vadd.f32 %v1065_v32, %v3008_v56  ;;  %v1056_v32 = vadd.f32 %v1055_v28, %v3008_v56  ;;  %v1046_v28 = vadd.f32 %v3113_v12, %v3008_v56 }
 0x11e   : > { %v1067_v35 = vpop.f32.mrf.mxu1 }
 0x11f   : > { %v1068_v7 = vadd.f32 %v1067_v35, %v3020_v61  ;;  %v1095_v31 = vpack.c.bf16 %v1066_v18, %v1062_v15  ;;  %v1044_v35 = vadd.f32 %v3105_v3, %v3020_v61  ;;  %v1094_v3 = vpack.c.bf16 %v1056_v32, %v1052_v30 }
 0x120   : > { %v1071_v36 = vpop.f32.mrf.mxu1  ;;  %v1093_v43 = vpack.c.bf16 %v1046_v28, %v1042_v24 }
 0x121   : > { %v1072_v46 = vadd.f32 %v1071_v36, %v3008_v56  ;;  %v1103_v58 = vpack.c.bf16 %v1068_v7, %v1064_v5  ;;  %v1048_v36 = vadd.f32 %v1047_v20, %v3020_v61  ;;  %v1100_v20 = vpack.c.bf16 %v1038_v29, %v1034_v26 }
 0x122   : > { %v1073_v39 = vpop.f32.mrf.mxu1 }
 0x123   : > { %v1074_v50 = vadd.f32 %v1073_v39, %v3020_v61  ;;  %v1102_v39 = vpack.c.bf16 %v1058_v27, %v1054_v19 }
 0x124   : > { %v1075_v42 = vpop.f32.mrf.mxu1 }
 0x125   : > { %v1076_v47 = vadd.f32 %v1075_v42, %v3008_v56  ;;  %v1101_v42 = vpack.c.bf16 %v1048_v36, %v1044_v35 }
 0x126   : > { %v1077_v6 = vpop.f32.mrf.mxu1 }
 0x127   : > { %v1078_v51 = vadd.f32 %v1077_v6, %v3020_v61  ;;  %v1096_v60 = vpack.c.bf16 %v1076_v47, %v1072_v46 }
 0x128   : > { %v1081_v44 = vpop.f32.mrf.mxu1 }
 0x129   : > { %v1082_v48 = vadd.f32 %v1081_v44, %v3008_v56  ;;  %v1104_v8 = vpack.c.bf16 %v1078_v51, %v1074_v50 }
 0x12a   : > { %v1083_v45 = vpop.f32.mrf.mxu1 }
 0x12b   : > { %v1084_v52 = vadd.f32 %v1083_v45, %v3020_v61 }
 0x12c   : > { %v1085_v49 = vpop.f32.mrf.mxu1 }
 0x12d   : > { %v1086_v53 = vadd.f32 %v1085_v49, %v3008_v56 }
 0x12e   : > { %v1087_v54 = vpop.f32.mrf.mxu1 }
 0x12f   : > { %v1097_v2 = vpack.c.bf16 %v1086_v53, %v1082_v48  ;;  %v1088_v4 = vadd.f32 %v1087_v54, %v3020_v61 }
 0x131   : > { %v1105_v11 = vpack.c.bf16 %v1088_v4, %v1084_v52  ;;  %2408 = vmatprep.subr.bf16.mxu1 %v1097_v2 }
 0x132   : > { %2409 = vmatpush3.bf16.xpose.msra.mxu1 %v1097_v2 }
 0x133   : > { %2440 = vmatprep.subr.bf16.mxu0 %v1105_v11  ;;  %2410 = vmatprep.subr.bf16.mxu1 %v1096_v60 }
 0x134   : > { %2441 = vmatpush3.bf16.msra.mxu0 %v1105_v11 }
 0x135   : > { %2442 = vmatprep.subr.bf16.mxu0 %v1104_v8 }
 0x138   : > { %2443 = vmatpush3.bf16.msra.mxu0 %v1104_v8 }
 0x139   : > { %2444 = vmatprep.subr.bf16.mxu0 %v1103_v58 }
 0x13a   : > { %2411 = vmatpush3.bf16.xpose.msra.mxu1 %v1096_v60 }
 0x13b   : > { %2412 = vmatprep.subr.bf16.mxu1 %v1095_v31 }
 0x13c   : > { %2445 = vmatpush3.bf16.msra.mxu0 %v1103_v58 }
 0x13d   : > { %2446 = vmatprep.subr.bf16.mxu0 %v1102_v39 }
 0x140   : > { %2447 = vmatpush3.bf16.msra.mxu0 %v1102_v39 }
 0x141   : > { %2448 = vmatprep.subr.bf16.mxu0 %v1101_v42 }
 0x142   : > { %2413 = vmatpush3.bf16.xpose.msra.mxu1 %v1095_v31 }
 0x143   : > { %2414 = vmatprep.subr.bf16.mxu1 %v1094_v3 }
 0x144   : > { %2449 = vmatpush3.bf16.msra.mxu0 %v1101_v42  ;;  %v2226_v42 = vld [vmem:[%s3386_s3] ss:$0 sm:$0xff] }
 0x145   : > { %2450 = vmatprep.subr.bf16.mxu0 %v1100_v20 }
 0x148   : > { %2451 = vmatpush3.bf16.msra.mxu0 %v1100_v20 }
 0x149   : > { %2452 = vmatprep.subr.bf16.mxu0 %v3073_v41 }
 0x14a   : > { %2415 = vmatpush3.bf16.xpose.msra.mxu1 %v1094_v3 }
 0x14b   : > { %2416 = vmatprep.subr.bf16.mxu1 %v1093_v43 }
 0x14c   : > { %2453 = vmatpush3.bf16.msra.mxu0 %v3073_v41 }
 0x14d   : > { %2454 = vmatprep.subr.bf16.mxu0 %v3045_v17 }
 0x150   : > { %2455 = vmatpush3.bf16.msra.mxu0 %v3045_v17  ;;  %v2217_v17 = vld [vmem:[%s3390_s7] ss:$0 sm:$0xff] }
 0x152   : > { %2417 = vmatpush3.bf16.xpose.msra.mxu1 %v1093_v43 }
 0x153   : > { %2418 = vmatprep.subr.bf16.mxu1 %v3092_v59 }
 0x15a   : > { %2419 = vmatpush3.bf16.xpose.msra.mxu1 %v3092_v59 }
 0x15b   : > { %2420 = vmatprep.subr.bf16.mxu1 %v3061_v34 }
 0x162   : > { %2421 = vmatpush3.bf16.xpose.msra.mxu1 %v3061_v34 }
 0x163   : > { %2422 = vmatprep.subr.bf16.mxu1 %v3033_v10 }
 0x16a   : > { %2423 = vmatpush3.bf16.xpose.msra.mxu1 %v3033_v10 }
 0x1bd   : > { %v2394_v56 = vpop.f32.mrf.mxu0 }
 0x1be   : > { %v1220_v59 = vadd.f32 %v2394_v56, %v2217_v17 }
 0x1bf   : > { %v1211_v61 = vpop.f32.mrf.mxu0 }
 0x1c0   : > { %v1212_v12 = vadd.f32 %v2217_v17, %v1211_v61 }
 0x1c1   : > { %v2395_v41 = vpop.f32.mrf.mxu0 }
 0x1c2   : > { %v1223_v55 = vadd.f32 %v2395_v41, %v2217_v17 }
 0x1c3   : > { %v1214_v0 = vpop.f32.mrf.mxu0 }
 0x1c4   : > { %v1215_v6 = vadd.f32 %v2217_v17, %v1214_v0  ;;  %v1275_v46 = vpack.c.bf16 %v1223_v55, %v1220_v59 }
 0x1c5   : > { %v2398_v44 = vpop.f32.mrf.mxu0 }
 0x1c6   : > { %v1274_v45 = vpack.c.bf16 %v1215_v6, %v1212_v12  ;;  %v1236_v51 = vadd.f32 %v2398_v44, %v2217_v17 }
 0x1c7   : > { %v1227_v34 = vpop.f32.mrf.mxu0 }
 0x1c8   : > { %2424 = vmatprep.mubr.bf16.mxu1 %v1274_v45  ;;  %v1228_v49 = vadd.f32 %v2217_v17, %v1227_v34 }
 0x1c9   : > { %v2399_v47 = vpop.f32.mrf.mxu0  ;;  %2425 = vmatmul.mubr.bf16.vlgmr.msra.gmra.mxu1 %v1275_v46 }
 0x1ca   : > { %v1239_v10 = vadd.f32 %v2399_v47, %v2217_v17 }
 0x1cb   : > { %v1230_v48 = vpop.f32.mrf.mxu0 }
 0x1cc   : > { %v1231_v50 = vadd.f32 %v2217_v17, %v1230_v48  ;;  %v1277_v54 = vpack.c.bf16 %v1239_v10, %v1236_v51 }
 0x1cd   : > { %v2402_v52 = vpop.f32.mrf.mxu0 }
 0x1ce   : > { %v1276_v53 = vpack.c.bf16 %v1231_v50, %v1228_v49  ;;  %v1252_v11 = vadd.f32 %v2402_v52, %v2217_v17 }
 0x1cf   : > { %v1243_v60 = vpop.f32.mrf.mxu0 }
 0x1d0   : > { %2428 = vmatprep.mubr.bf16.mxu1 %v1276_v53  ;;  %v1244_v7 = vadd.f32 %v2217_v17, %v1243_v60 }
 0x1d1   : > { %v2403_v2 = vpop.f32.mrf.mxu0  ;;  %2429 = vmatmul.mubr.bf16.gmra.mxu1 %v1277_v54 }
 0x1d2   : > { %v1255_v4 = vadd.f32 %v2403_v2, %v2217_v17 }
 0x1d3   : > { %v1246_v5 = vpop.f32.mrf.mxu0 }
 0x1d4   : > { %v1247_v8 = vadd.f32 %v2217_v17, %v1246_v5  ;;  %v1279_v19 = vpack.c.bf16 %v1255_v4, %v1252_v11 }
 0x1d5   : > { %v2406_v15 = vpop.f32.mrf.mxu0 }
 0x1d6   : > { %v1278_v18 = vpack.c.bf16 %v1247_v8, %v1244_v7  ;;  %v1268_v30 = vadd.f32 %v2406_v15, %v2217_v17 }
 0x1d7   : > { %v1259_v27 = vpop.f32.mrf.mxu0 }
 0x1d8   : > { %2432 = vmatprep.mubr.bf16.mxu1 %v1278_v18  ;;  %v1260_v36 = vadd.f32 %v2217_v17, %v1259_v27 }
 0x1d9   : > { %v2407_v58 = vpop.f32.mrf.mxu0  ;;  %2433 = vmatmul.mubr.bf16.gmra.mxu1 %v1279_v19 }
 0x1da   : > { %v1271_v31 = vadd.f32 %v2407_v58, %v2217_v17 }
 0x1db   : > { %v1262_v35 = vpop.f32.mrf.mxu0 }
 0x1dc   : > { %v1263_v39 = vadd.f32 %v2217_v17, %v1262_v35  ;;  %v1281_v26 = vpack.c.bf16 %v1271_v31, %v1268_v30 }
 0x1de   : > { %v1280_v32 = vpack.c.bf16 %v1263_v39, %v1260_v36 }
 0x1e0   : > { %2436 = vmatprep.mubr.bf16.mxu1 %v1280_v32 }
 0x1e1   : > { %2437 = vmatmul.mubr.bf16.gmra.mxu1 %v1281_v26 }
 0x289   : > { %v2426_v29 = vpop.f32.mrf.mxu1 }
 0x28a   : > { %v1381_v3 = vmul.f32 0.088388346, %v2426_v29 }
 0x28b   : > { %v1316_v20 = vpop.f32.mrf.mxu1 }
 0x28c   : > { %v1379_v24 = vmul.f32 0.088388346, %v1316_v20  ;;  %v3176_v28 = vadd.f32 %v2226_v42, %v1381_v3 }
 0x28d   : > { %v2427_v43 = vpop.f32.mrf.mxu1 }
 0x28e   : > { %v1382_v56 = vmul.f32 0.088388346, %v2427_v43  ;;  %1422 = vmax.xlane.f32.xlu1 %v3176_v28  ;;  %v1402_v61 = vadd.f32 %v2226_v42, %v1379_v24 }
 0x28f   : > { %v1319_v41 = vpop.f32.mrf.mxu1 }
 0x290   : > { %v1380_v17 = vmul.f32 0.088388346, %v1319_v41  ;;  %1418 = vmax.xlane.f32.xlu0 %v1402_v61  ;;  %v3179_v55 = vadd.f32 %v2226_v42, %v1382_v56 }
 0x291   : > { %v2430_v0 = vpop.f32.mrf.mxu1 }
 0x292   : > { %1424 = vmax.xlane.f32.xlu1 %v3179_v55  ;;  %v1403_v12 = vadd.f32 %v2226_v42, %v1380_v17  ;;  %v1385_v45 = vmul.f32 0.088388346, %v2430_v0 }
 0x293   : > { %v1332_v6 = vpop.f32.mrf.mxu1 }
 0x294   : > { %v1383_v59 = vmul.f32 0.088388346, %v1332_v6  ;;  %1420 = vmax.xlane.f32.xlu0 %v1403_v12  ;;  %v1408_v49 = vadd.f32 %v2226_v42, %v1385_v45 }
 0x295   : > { %v2431_v44 = vpop.f32.mrf.mxu1 }
 0x296   : > { %v1406_v46 = vadd.f32 %v2226_v42, %v1383_v59  ;;  %v1386_v48 = vmul.f32 0.088388346, %v2431_v44 }
 0x297   : > { %v1335_v34 = vpop.f32.mrf.mxu1 }
 0x298   : > { %v1384_v47 = vmul.f32 0.088388346, %v1335_v34  ;;  %1426 = vmax.xlane.f32.xlu0 %v1406_v46  ;;  %v1409_v60 = vadd.f32 %v2226_v42, %v1386_v48 }
 0x299   : > { %v2434_v10 = vpop.f32.mrf.mxu1 }
 0x29a   : > { %v1407_v50 = vadd.f32 %v2226_v42, %v1384_v47  ;;  %v1389_v54 = vmul.f32 0.088388346, %v2434_v10 }
 0x29b   : > { %v1348_v51 = vpop.f32.mrf.mxu1 }
 0x29c   : > { %v1387_v52 = vmul.f32 0.088388346, %v1348_v51  ;;  %1430 = vmax.xlane.f32.xlu0 %v1408_v49  ;;  %1428 = vmax.xlane.f32.xlu1 %v1407_v50  ;;  %v3182_v11 = vadd.f32 %v2226_v42, %v1389_v54 }
 0x29d   : > { %v2435_v53 = vpop.f32.mrf.mxu1 }
 0x29e   : > { %v1410_v2 = vadd.f32 %v2226_v42, %v1387_v52  ;;  %v1390_v8 = vmul.f32 0.088388346, %v2435_v53 }
 0x29f   : > { %v1351_v4 = vpop.f32.mrf.mxu1 }
 0x2a0   : > { %v1388_v5 = vmul.f32 0.088388346, %v1351_v4  ;;  %1432 = vmax.xlane.f32.xlu1 %v1409_v60  ;;  %1434 = vmax.xlane.f32.xlu0 %v1410_v2  ;;  %v3188_v31 = vadd.f32 %v2226_v42, %v1390_v8 }
 0x2a1   : > { %v2438_v7 = vpop.f32.mrf.mxu1 }
 0x2a2   : > { %v3184_v15 = vadd.f32 %v2226_v42, %v1388_v5  ;;  %v1393_v58 = vmul.f32 0.088388346, %v2438_v7 }
 0x2a3   : > { %v1364_v18 = vpop.f32.mrf.mxu1 }
 0x2a4   : > { %v1391_v19 = vmul.f32 0.088388346, %v1364_v18  ;;  %1438 = vmax.xlane.f32.xlu0 %v3182_v11  ;;  %1436 = vmax.xlane.f32.xlu1 %v3184_v15  ;;  %v3194_v32 = vadd.f32 %v2226_v42, %v1393_v58 }
 0x2a5   : > { %v2439_v27 = vpop.f32.mrf.mxu1 }
 0x2a6   : > { %v3190_v35 = vadd.f32 %v2226_v42, %v1391_v19  ;;  %v1394_v30 = vmul.f32 0.088388346, %v2439_v27 }
 0x2a7   : > { %v1367_v36 = vpop.f32.mrf.mxu1 }
 0x2a8   : > { %v1392_v39 = vmul.f32 0.088388346, %v1367_v36  ;;  %1440 = vmax.xlane.f32.xlu1 %v3188_v31  ;;  %1442 = vmax.xlane.f32.xlu0 %v3190_v35  ;;  %v3200_v29 = vadd.f32 %v2226_v42, %v1394_v30 }
 0x2aa   : > { %v3196_v26 = vadd.f32 %v2226_v42, %v1392_v39 }
 0x2ac   : > { %1446 = vmax.xlane.f32.xlu0 %v3194_v32  ;;  %1444 = vmax.xlane.f32.xlu1 %v3196_v26 }
 0x2b0   : > { %1448 = vmax.xlane.f32.xlu1 %v3200_v29 }
 0x317   : > { %v1423_v3 = vpop.xlane.xlu1 %1422 }
 0x318   : > { %v1452_v20 = vsub.f32 %v3176_v28, %v1423_v3 }
 0x319   : > { %v1419_v24 = vpop.xlane.xlu0 %1418 }
 0x31a   : > { %v1450_v43 = vsub.f32 %v1402_v61, %v1419_v24  ;;  %v1470_v17 = vmul.f32 1.442695, %v1452_v20 }
 0x31b   : > { %v1425_v56 = vpop.xlane.xlu1 %1424 }
 0x31c   : > { %v1466_v41 = vmul.f32 1.442695, %v1450_v43  ;;  %v1453_v0 = vsub.f32 %v3179_v55, %v1425_v56 }
 0x31d   : > { %v1421_v6 = vpop.xlane.xlu0 %1420 }
 0x31e   : > { %2649 = vpow2.f32 %v1466_v41  ;;  %v1451_v59 = vsub.f32 %v1403_v12, %v1421_v6  ;;  %v1472_v45 = vmul.f32 1.442695, %v1453_v0 }
 0x31f   : > { %2651 = vpow2.f32 %v1470_v17 }
 0x320   : > { %v1468_v44 = vmul.f32 1.442695, %v1451_v59 }
 0x321   : > { %v1427_v42 = vpop.xlane.xlu0 %1426 }
 0x322   : > { %2653 = vpow2.f32 %v1468_v44  ;;  %v1454_v34 = vsub.f32 %v1406_v46, %v1427_v42 }
 0x323   : > { %2655 = vpow2.f32 %v1472_v45 }
 0x324   : > { %v1474_v47 = vmul.f32 1.442695, %v1454_v34 }
 0x325   : > { %v1431_v10 = vpop.xlane.xlu0 %1430  ;;  %v1429_v28 = vpop.xlane.xlu1 %1428 }
 0x326   : > { %2657 = vpow2.f32 %v1474_v47  ;;  %v1456_v61 = vsub.f32 %v1408_v49, %v1431_v10  ;;  %v1455_v48 = vsub.f32 %v1407_v50, %v1429_v28  ;;  %v2633_v28 = vld [vmem:[%s3393_s10 + $0x38] sm:$0xff]  }
 0x327   : > { %2472 = vmatprep.subr.bf16.mxu0 %v2633_v28 }
 0x328   : > { %v1478_v51 = vmul.f32 1.442695, %v1456_v61  ;;  %v1476_v52 = vmul.f32 1.442695, %v1455_v48 }
 0x329   : > { %v1433_v53 = vpop.xlane.xlu1 %1432  ;;  %v1435_v55 = vpop.xlane.xlu0 %1434 }
 0x32a   : > { %2659 = vpow2.f32 %v1478_v51  ;;  %v1457_v54 = vsub.f32 %v1409_v60, %v1433_v53  ;;  %v1458_v12 = vsub.f32 %v1410_v2, %v1435_v55 }
 0x32b   : > { %v3205_v4 = vpop.eup %2649  ;;  %2661 = vpow2.f32 %v1476_v52 }
 0x32c   : > { %v1480_v5 = vmul.f32 1.442695, %v1457_v54  ;;  %v1482_v7 = vmul.f32 1.442695, %v1458_v12  ;;  %1498 = vadd.xlane.f32.xlu0 %v3205_v4  ;;  %v3208_v18 = vpop.eup %2651 }
 0x32d   : > { %v1439_v46 = vpop.xlane.xlu0 %1438  ;;  %v1437_v8 = vpop.xlane.xlu1 %1436 }
 0x32e   : > { %2663 = vpow2.f32 %v1480_v5  ;;  %v1460_v49 = vsub.f32 %v3182_v11, %v1439_v46  ;;  %v1459_v50 = vsub.f32 %v3184_v15, %v1437_v8 }
 0x32f   : > { %v3212_v19 = vpop.eup %2653  ;;  %2665 = vpow2.f32 %v1482_v7 }
 0x330   : > { %v1486_v60 = vmul.f32 1.442695, %v1460_v49  ;;  %v1484_v2 = vmul.f32 1.442695, %v1459_v50  ;;  %1502 = vadd.xlane.f32.xlu0 %v3208_v18  ;;  %1500 = vadd.xlane.f32.xlu1 %v3212_v19  ;;  %v3216_v36 = vpop.eup %2655 }
 0x331   : > { %v1441_v27 = vpop.xlane.xlu1 %1440  ;;  %v1443_v58 = vpop.xlane.xlu0 %1442 }
 0x332   : > { %2667 = vpow2.f32 %v1486_v60  ;;  %v1461_v39 = vsub.f32 %v3188_v31, %v1441_v27  ;;  %v1462_v11 = vsub.f32 %v3190_v35, %v1443_v58 }
 0x333   : > { %v3220_v30 = vpop.eup %2657  ;;  %2669 = vpow2.f32 %v1484_v2 }
 0x334   : > { %v1488_v15 = vmul.f32 1.442695, %v1461_v39  ;;  %v1490_v3 = vmul.f32 1.442695, %v1462_v11  ;;  %1506 = vadd.xlane.f32.xlu0 %v3220_v30  ;;  %1504 = vadd.xlane.f32.xlu1 %v3216_v36 }
 0x335   : > { %v1447_v20 = vpop.xlane.xlu0 %1446  ;;  %v1445_v24 = vpop.xlane.xlu1 %1444 }
 0x336   : > { %2671 = vpow2.f32 %v1488_v15  ;;  %v1464_v43 = vsub.f32 %v3194_v32, %v1447_v20  ;;  %v1463_v56 = vsub.f32 %v3196_v26, %v1445_v24 }
 0x337   : > { %v3226_v41 = vpop.eup %2659  ;;  %2673 = vpow2.f32 %v1490_v3 }
 0x338   : > { %v3228_v31 = vpop.eup %2661  ;;  %v1494_v35 = vmul.f32 1.442695, %v1464_v43  ;;  %v1492_v17 = vmul.f32 1.442695, %v1463_v56  ;;  %1510 = vadd.xlane.f32.xlu0 %v3226_v41 }
 0x339   : > { %1508 = vadd.xlane.f32.xlu1 %v3228_v31  ;;  %v1449_v0 = vpop.xlane.xlu1 %1448 }
 0x33a   : > { %2675 = vpow2.f32 %v1494_v35  ;;  %v1465_v6 = vsub.f32 %v3200_v29, %v1449_v0  ;;  %v2635_v0 = vld [vmem:[%s3393_s10 + $0x28] sm:$0xff]  }
 0x33b   : > { %v3233_v59 = vpop.eup %2663  ;;  %2677 = vpow2.f32 %v1492_v17 }
 0x33c   : > { %v3235_v32 = vpop.eup %2665  ;;  %v1496_v26 = vmul.f32 1.442695, %v1465_v6 }
 0x33d   : > { %1514 = vadd.xlane.f32.xlu0 %v3235_v32  ;;  %1512 = vadd.xlane.f32.xlu1 %v3233_v59 }
 0x33e   : > { %2679 = vpow2.f32 %v1496_v26 }
 0x33f   : > { %v3239_v44 = vpop.eup %2667 }
 0x340   : > { %v3241_v45 = vpop.eup %2669 }
 0x341   : > { %1518 = vadd.xlane.f32.xlu0 %v3239_v44  ;;  %1516 = vadd.xlane.f32.xlu1 %v3241_v45 }
 0x343   : > { %v3245_v29 = vpop.eup %2671 }
 0x344   : > { %v3247_v42 = vpop.eup %2673 }
 0x345   : > { %1522 = vadd.xlane.f32.xlu0 %v3247_v42  ;;  %1520 = vadd.xlane.f32.xlu1 %v3245_v29 }
 0x347   : > { %v3251_v34 = vpop.eup %2675 }
 0x348   : > { %v3253_v47 = vpop.eup %2677 }
 0x349   : > { %1526 = vadd.xlane.f32.xlu0 %v3251_v34  ;;  %1524 = vadd.xlane.f32.xlu1 %v3253_v47 }
 0x34b   : > { %v3257_v10 = vpop.eup %2679 }
 0x34d   : > { %1528 = vadd.xlane.f32.xlu1 %v3257_v10 }
 0x3b5   : > { %v1499_v61 = vpop.xlane.xlu0 %1498 }
 0x3b6   : > { %2681 = vrcp.f32 %v1499_v61 }
 0x3b9   : > { %v1503_v48 = vpop.xlane.xlu0 %1502  ;;  %v1501_v51 = vpop.xlane.xlu1 %1500 }
 0x3ba   : > { %2683 = vrcp.f32 %v1501_v51 }
 0x3bb   : > { %2685 = vrcp.f32 %v1503_v48  ;;  %v2636_v48 = vld [vmem:[%s3393_s10 + $0x20] sm:$0xff]  }
 0x3bd   : > { %v1507_v52 = vpop.xlane.xlu0 %1506  ;;  %v1505_v53 = vpop.xlane.xlu1 %1504 }
 0x3be   : > { %2687 = vrcp.f32 %v1505_v53 }
 0x3bf   : > { %2689 = vrcp.f32 %v1507_v52 }
 0x3c1   : > { %v1511_v55 = vpop.xlane.xlu0 %1510 }
 0x3c2   : > { %v1509_v54 = vpop.xlane.xlu1 %1508 }
 0x3c3   : > { %2691 = vrcp.f32 %v1509_v54  ;;  %v2682_v12 = vpop.eup %2681 }
 0x3c4   : > { %2693 = vrcp.f32 %v1511_v55  ;;  %v1546_v8 = vmul.f32 %v2682_v12, %v3205_v4  ;;  %v2634_v4 = vld [vmem:[%s3393_s10 + $0x30] sm:$0xff]  }
 0x3c6   : > { %v1515_v5 = vpop.xlane.xlu0 %1514  ;;  %v1513_v7 = vpop.xlane.xlu1 %1512 }
 0x3c7   : > { %v2684_v46 = vpop.eup %2683  ;;  %2695 = vrcp.f32 %v1513_v7 }
 0x3c8   : > { %v1547_v49 = vmul.f32 %v2684_v46, %v3212_v19  ;;  %v2686_v50 = vpop.eup %2685  ;;  %2697 = vrcp.f32 %v1515_v5 }
 0x3c9   : > { %v1548_v39 = vmul.f32 %v2686_v50, %v3208_v18 }
 0x3ca   : > { %v1519_v60 = vpop.xlane.xlu0 %1518  ;;  %v1517_v2 = vpop.xlane.xlu1 %1516  ;;  %v1562_v27 = vpack.c.bf16 %v1547_v49, %v1546_v8 }
 0x3cb   : > { %v2688_v58 = vpop.eup %2687  ;;  %2699 = vrcp.f32 %v1517_v2 }
 0x3cc   : > { %2456 = vmatprep.mubr.bf16.mxu0 %v1562_v27  ;;  %v1549_v11 = vmul.f32 %v2688_v58, %v3216_v36  ;;  %v2690_v15 = vpop.eup %2689  ;;  %2701 = vrcp.f32 %v1519_v60  ;;  %v2639_v58 = vld [vmem:[%s3393_s10 + $0x8] sm:$0xff]  }
 0x3cd   : > { %v1550_v43 = vmul.f32 %v2690_v15, %v3220_v30 }
 0x3ce   : > { %v1523_v3 = vpop.xlane.xlu0 %1522  ;;  %v1521_v20 = vpop.xlane.xlu1 %1520  ;;  %v1563_v24 = vpack.c.bf16 %v1549_v11, %v1548_v39  ;;  %v2644_v39 = vld [vmem:[%s3395_s12 + $0x20] sm:$0xff]   ;;  %v2645_v11 = vld [vmem:[%s3395_s12 + $0x18] sm:$0xff]  }
 0x3cf   : > { %2703 = vrcp.f32 %v1521_v20 }
 0x3d0   : > { %v2692_v19 = vpop.eup %2691  ;;  %2457 = vmatmul.mubr.bf16.vlgmr.msra.gmra.mxu0 %v1563_v24  ;;  %2705 = vrcp.f32 %v1523_v3 }
 0x3d1   : > { %v1551_v56 = vmul.f32 %v2692_v19, %v3228_v31  ;;  %2473 = vmatpush3.bf16.msra.mxu0 %v2633_v28  ;;  %v2694_v36 = vpop.eup %2693 }
 0x3d2   : > { %v1527_v18 = vpop.xlane.xlu0 %1526  ;;  %v1525_v35 = vpop.xlane.xlu1 %1524  ;;  %2474 = vmatprep.subr.bf16.mxu0 %v2634_v4  ;;  %v1552_v30 = vmul.f32 %v2694_v36, %v3226_v41 }
 0x3d3   : > { %v1564_v17 = vpack.c.bf16 %v1551_v56, %v1550_v43  ;;  %2707 = vrcp.f32 %v1525_v35 }
 0x3d4   : > { %v2696_v6 = vpop.eup %2695  ;;  %2709 = vrcp.f32 %v1527_v18 }
 0x3d5   : > { %2460 = vmatprep.mubr.bf16.mxu0 %v1564_v17  ;;  %v1553_v31 = vmul.f32 %v2696_v6, %v3233_v59  ;;  %2475 = vmatpush3.bf16.msra.mxu0 %v2634_v4  ;;  %v2698_v61 = vpop.eup %2697  ;;  %v2637_v59 = vld [vmem:[%s3393_s10 + $0x18] sm:$0xff]  }
 0x3d6   : > { %v1529_v26 = vpop.xlane.xlu1 %1528  ;;  %2476 = vmatprep.subr.bf16.mxu0 %v2635_v0  ;;  %v1554_v52 = vmul.f32 %v2698_v61, %v3235_v32  ;;  %v2638_v32 = vld [vmem:[%s3393_s10 + $0x10] sm:$0xff]  }
 0x3d7   : > { %2711 = vrcp.f32 %v1529_v26  ;;  %v1565_v28 = vpack.c.bf16 %v1553_v31, %v1552_v30 }
 0x3d8   : > { %v2700_v51 = vpop.eup %2699 }
 0x3d9   : > { %2461 = vmatmul.mubr.bf16.gmra.mxu0 %v1565_v28  ;;  %v1555_v53 = vmul.f32 %v2700_v51, %v3241_v45  ;;  %v2702_v55 = vpop.eup %2701 }
 0x3da   : > { %2477 = vmatpush3.bf16.msra.mxu0 %v2635_v0  ;;  %v1556_v12 = vmul.f32 %v2702_v55, %v3239_v44 }
 0x3db   : > { %v1566_v41 = vpack.c.bf16 %v1555_v53, %v1554_v52  ;;  %2478 = vmatprep.subr.bf16.mxu0 %v2636_v48 }
 0x3dc   : > { %v2704_v54 = vpop.eup %2703 }
 0x3dd   : > { %2464 = vmatprep.mubr.bf16.mxu0 %v1566_v41  ;;  %v1557_v5 = vmul.f32 %v2704_v54, %v3245_v29  ;;  %v2706_v7 = vpop.eup %2705  ;;  %v2646_v41 = vld [vmem:[%s3395_s12 + $0x10] sm:$0xff]   ;;  %v2648_v54 = vld [vmem:[%s3395_s12] sm:$0xff]  }
 0x3de   : > { %2479 = vmatpush3.bf16.msra.mxu0 %v2636_v48  ;;  %v1558_v49 = vmul.f32 %v2706_v7, %v3247_v42  ;;  %v2640_v42 = vld [vmem:[%s3393_s10] sm:$0xff]  }
 0x3df   : > { %v1567_v46 = vpack.c.bf16 %v1557_v5, %v1556_v12  ;;  %2480 = vmatprep.subr.bf16.mxu0 %v2637_v59  ;;  %v2227_v7 = vld [vmem:[%s3394_s11] ss:$0 sm:$0xff] }
 0x3e0   : > { %v2708_v45 = vpop.eup %2707 }
 0x3e1   : > { %v2710_v8 = vpop.eup %2709  ;;  %2465 = vmatmul.mubr.bf16.gmra.mxu0 %v1567_v46  ;;  %v1559_v50 = vmul.f32 %v2708_v45, %v3253_v47  ;;  %v2642_v47 = vld [vmem:[%s3395_s12 + $0x30] sm:$0xff]  }
 0x3e2   : > { %2481 = vmatpush3.bf16.msra.mxu0 %v2637_v59  ;;  %v1560_v29 = vmul.f32 %v2710_v8, %v3251_v34  ;;  %v2641_v34 = vld [vmem:[%s3395_s12 + $0x38] sm:$0xff]   ;;  %v2647_v59 = vld [vmem:[%s3395_s12 + $0x8] sm:$0xff]  }
 0x3e3   : > { %v1568_v44 = vpack.c.bf16 %v1559_v50, %v1558_v49  ;;  %2482 = vmatprep.subr.bf16.mxu0 %v2638_v32  ;;  %2504 = vmatprep.subr.bf16.mxu1 %v2641_v34 }
 0x3e4   : > { %v2712_v60 = vpop.eup %2711  ;;  %2505 = vmatpush3.bf16.msra.mxu1 %v2641_v34 }
 0x3e5   : > { %v1561_v2 = vmul.f32 %v2712_v60, %v3257_v10  ;;  %2468 = vmatprep.mubr.bf16.mxu0 %v1568_v44  ;;  %2506 = vmatprep.subr.bf16.mxu1 %v2642_v47  ;;  %v2643_v10 = vld [vmem:[%s3395_s12 + $0x28] sm:$0xff]  }
 0x3e6   : > { %2483 = vmatpush3.bf16.msra.mxu0 %v2638_v32 }
 0x3e7   : > { %v1569_v27 = vpack.c.bf16 %v1561_v2, %v1560_v29  ;;  %2484 = vmatprep.subr.bf16.mxu0 %v2639_v58 }
 0x3e8   : > { %2507 = vmatpush3.bf16.msra.mxu1 %v2642_v47 }
 0x3e9   : > { %2469 = vmatmul.mubr.bf16.gmra.mxu0 %v1569_v27  ;;  %2508 = vmatprep.subr.bf16.mxu1 %v2643_v10 }
 0x3ea   : > { %2485 = vmatpush3.bf16.msra.mxu0 %v2639_v58 }
 0x3eb   : > { %2486 = vmatprep.subr.bf16.mxu0 %v2640_v42 }
 0x3ec   : > { %2509 = vmatpush3.bf16.msra.mxu1 %v2643_v10 }
 0x3ed   : > { %2510 = vmatprep.subr.bf16.mxu1 %v2644_v39 }
 0x3ee   : > { %2487 = vmatpush3.bf16.msra.mxu0 %v2640_v42 }
 0x3f0   : > { %2511 = vmatpush3.bf16.msra.mxu1 %v2644_v39 }
 0x3f1   : > { %2512 = vmatprep.subr.bf16.mxu1 %v2645_v11 }
 0x3f4   : > { %2513 = vmatpush3.bf16.msra.mxu1 %v2645_v11 }
 0x3f5   : > { %2514 = vmatprep.subr.bf16.mxu1 %v2646_v41 }
 0x3f8   : > { %2515 = vmatpush3.bf16.msra.mxu1 %v2646_v41  ;;  %v2236_v41 = vld [vmem:[%s3396_s13] ss:$0 sm:$0xff] }
 0x3f9   : > { %2516 = vmatprep.subr.bf16.mxu1 %v2647_v59 }
 0x3fc   : > { %2517 = vmatpush3.bf16.msra.mxu1 %v2647_v59 }
 0x3fd   : > { %2518 = vmatprep.subr.bf16.mxu1 %v2648_v54 }
 0x400   : > { %2519 = vmatpush3.bf16.msra.mxu1 %v2648_v54 }
 0x490   : > { %v2458_v15 = vpop.f32.mrf.mxu0 }
 0x492   : > { %v1604_v3 = vpop.f32.mrf.mxu0 }
 0x494   : > { %v2459_v20 = vpop.f32.mrf.mxu0 }
 0x495   : > { %v1668_v19 = vpack.c.bf16 %v2459_v20, %v2458_v15 }
 0x496   : > { %v1607_v24 = vpop.f32.mrf.mxu0 }
 0x497   : > { %v1667_v4 = vpack.c.bf16 %v1607_v24, %v1604_v3 }
 0x499   : > { %v2462_v43 = vpop.f32.mrf.mxu0  ;;  %2488 = vmatprep.mubr.bf16.mxu0 %v1667_v4 }
 0x49a   : > { %2489 = vmatmul.mubr.bf16.vlgmr.msra.gmra.mxu0 %v1668_v19 }
 0x49b   : > { %v1620_v56 = vpop.f32.mrf.mxu0 }
 0x49d   : > { %v2463_v18 = vpop.f32.mrf.mxu0 }
 0x49e   : > { %v1670_v17 = vpack.c.bf16 %v2463_v18, %v2462_v43 }
 0x49f   : > { %v1623_v35 = vpop.f32.mrf.mxu0 }
 0x4a0   : > { %v1669_v36 = vpack.c.bf16 %v1623_v35, %v1620_v56 }
 0x4a1   : > { %v2466_v0 = vpop.f32.mrf.mxu0 }
 0x4a2   : > { %2492 = vmatprep.mubr.bf16.mxu0 %v1669_v36 }
 0x4a3   : > { %v1636_v6 = vpop.f32.mrf.mxu0  ;;  %2493 = vmatmul.mubr.bf16.gmra.mxu0 %v1670_v17 }
 0x4a5   : > { %v2467_v26 = vpop.f32.mrf.mxu0 }
 0x4a6   : > { %v1672_v61 = vpack.c.bf16 %v2467_v26, %v2466_v0 }
 0x4a7   : > { %v1639_v30 = vpop.f32.mrf.mxu0 }
 0x4a8   : > { %v1671_v31 = vpack.c.bf16 %v1639_v30, %v1636_v6 }
 0x4a9   : > { %v2470_v28 = vpop.f32.mrf.mxu0 }
 0x4aa   : > { %2496 = vmatprep.mubr.bf16.mxu0 %v1671_v31 }
 0x4ab   : > { %v1652_v48 = vpop.f32.mrf.mxu0  ;;  %2497 = vmatmul.mubr.bf16.gmra.mxu0 %v1672_v61 }
 0x4ad   : > { %v2471_v51 = vpop.f32.mrf.mxu0 }
 0x4ae   : > { %v1674_v55 = vpack.c.bf16 %v2471_v51, %v2470_v28 }
 0x4af   : > { %v1655_v52 = vpop.f32.mrf.mxu0 }
 0x4b0   : > { %v1673_v53 = vpack.c.bf16 %v1655_v52, %v1652_v48 }
 0x4b2   : > { %2500 = vmatprep.mubr.bf16.mxu0 %v1673_v53 }
 0x4b3   : > { %2501 = vmatmul.mubr.bf16.gmra.mxu0 %v1674_v55 }
 0x55a   : > { %v2490_v12 = vpop.f32.mrf.mxu0 }
 0x55b   : > { %v1789_v8 = vadd.f32 %v2490_v12, %v2227_v7 }
 0x55c   : > { %v1780_v5 = vpop.f32.mrf.mxu0 }
 0x55d   : > { %v1781_v32 = vadd.f32 %v2227_v7, %v1780_v5  ;;  %v1845_v27 = vadd.f32 %v1789_v8, %v3043_v16 }
 0x55e   : > { %v2491_v46 = vpop.f32.mrf.mxu0 }
 0x55f   : > { %v1792_v45 = vadd.f32 %v2491_v46, %v2227_v7  ;;  %v1843_v44 = vadd.f32 %v1781_v32, %v3037_v13 }
 0x560   : > { %v1783_v49 = vpop.f32.mrf.mxu0 }
 0x561   : > { %v1784_v50 = vadd.f32 %v2227_v7, %v1783_v49  ;;  %v1846_v60 = vadd.f32 %v1792_v45, %v3031_v9 }
 0x563   : > { %v1844_v29 = vadd.f32 %v1784_v50, %v3040_v14  ;;  %v2494_v2 = vpop.f32.mrf.mxu0  ;;  %v1860_v34 = vpack.c.bf16 %v1846_v60, %v1845_v27 }
 0x564   : > { %v1805_v11 = vadd.f32 %v2494_v2, %v2227_v7 }
 0x565   : > { %v1796_v58 = vpop.f32.mrf.mxu0  ;;  %v1859_v42 = vpack.c.bf16 %v1844_v29, %v1843_v44 }
 0x566   : > { %v1797_v10 = vadd.f32 %v2227_v7, %v1796_v58  ;;  %v1849_v16 = vadd.f32 %v1805_v11, %v3071_v40 }
 0x567   : > { %v2495_v47 = vpop.f32.mrf.mxu0  ;;  %2520 = vmatprep.mubr.bf16.mxu1 %v1859_v42 }
 0x568   : > { %v1808_v39 = vadd.f32 %v2495_v47, %v2227_v7  ;;  %2521 = vmatmul.mubr.bf16.vlgmr.msra.gmra.mxu1 %v1860_v34  ;;  %v1847_v13 = vadd.f32 %v1797_v10, %v3065_v37 }
 0x569   : > { %v1799_v15 = vpop.f32.mrf.mxu0 }
 0x56a   : > { %v1800_v3 = vadd.f32 %v2227_v7, %v1799_v15  ;;  %v1850_v9 = vadd.f32 %v1808_v39, %v3059_v33 }
 0x56b   : > { %v2498_v20 = vpop.f32.mrf.mxu0 }
 0x56c   : > { %v1848_v14 = vadd.f32 %v1800_v3, %v3068_v38  ;;  %v1862_v43 = vpack.c.bf16 %v1850_v9, %v1849_v16  ;;  %v1821_v35 = vadd.f32 %v2498_v20, %v2227_v7 }
 0x56d   : > { %v1812_v24 = vpop.f32.mrf.mxu0 }
 0x56e   : > { %v1861_v4 = vpack.c.bf16 %v1848_v14, %v1847_v13  ;;  %v1813_v56 = vadd.f32 %v2227_v7, %v1812_v24  ;;  %v1853_v40 = vadd.f32 %v1821_v35, %v3103_v1 }
 0x56f   : > { %v2499_v19 = vpop.f32.mrf.mxu0 }
 0x570   : > { %v1824_v18 = vadd.f32 %v2499_v19, %v2227_v7  ;;  %2524 = vmatprep.mubr.bf16.mxu1 %v1861_v4  ;;  %v1851_v37 = vadd.f32 %v1813_v56, %v3095_v62 }
 0x571   : > { %v1815_v36 = vpop.f32.mrf.mxu0  ;;  %2525 = vmatmul.mubr.bf16.gmra.mxu1 %v1862_v43 }
 0x572   : > { %v1816_v17 = vadd.f32 %v2227_v7, %v1815_v36  ;;  %v1854_v33 = vadd.f32 %v1824_v18, %v3090_v57 }
 0x573   : > { %v2502_v0 = vpop.f32.mrf.mxu0 }
 0x574   : > { %v1852_v38 = vadd.f32 %v1816_v17, %v3098_v63  ;;  %v1864_v31 = vpack.c.bf16 %v1854_v33, %v1853_v40  ;;  %v1837_v48 = vadd.f32 %v2502_v0, %v2227_v7 }
 0x575   : > { %v1828_v6 = vpop.f32.mrf.mxu0 }
 0x576   : > { %v1863_v26 = vpack.c.bf16 %v1852_v38, %v1851_v37  ;;  %v1829_v61 = vadd.f32 %v2227_v7, %v1828_v6  ;;  %v1857_v1 = vadd.f32 %v1837_v48, %v3127_v25 }
 0x577   : > { %v2503_v30 = vpop.f32.mrf.mxu0 }
 0x578   : > { %v1840_v28 = vadd.f32 %v2503_v30, %v2227_v7  ;;  %2528 = vmatprep.mubr.bf16.mxu1 %v1863_v26  ;;  %v1855_v62 = vadd.f32 %v1829_v61, %v3121_v22 }
 0x579   : > { %v1831_v51 = vpop.f32.mrf.mxu0  ;;  %2529 = vmatmul.mubr.bf16.gmra.mxu1 %v1864_v31 }
 0x57a   : > { %v1832_v52 = vadd.f32 %v2227_v7, %v1831_v51  ;;  %v1858_v57 = vadd.f32 %v1840_v28, %v3118_v21 }
 0x57c   : > { %v1856_v63 = vadd.f32 %v1832_v52, %v3124_v23  ;;  %v1866_v55 = vpack.c.bf16 %v1858_v57, %v1857_v1 }
 0x57e   : > { %v1865_v53 = vpack.c.bf16 %v1856_v63, %v1855_v62 }
 0x580   : > { %2532 = vmatprep.mubr.bf16.mxu1 %v1865_v53 }
 0x581   : > { %2533 = vmatmul.mubr.bf16.gmra.mxu1 %v1866_v55 }
 0x628   : > { %v2522_v21 = vpop.f32.mrf.mxu1 }
 0x629   : > { %v1981_v22 = vadd.f32 %v2522_v21, %v2236_v41 }
 0x62a   : > { %v1972_v23 = vpop.f32.mrf.mxu1 }
 0x62b   : > { %2037 = vst [vmem:[%s3350_s22 + $0x10] sm:$0xff] %v1981_v22  ;;  %v1973_v25 = vadd.f32 %v2236_v41, %v1972_v23 }
 0x62c   : > { %v2523_v59 = vpop.f32.mrf.mxu1 }
 0x62d   : > { %2035 = vst [vmem:[%s3350_s22] sm:$0xff] %v1973_v25  ;;  %v1984_v54 = vadd.f32 %v2523_v59, %v2236_v41 }
 0x62e   : > { %v1975_v12 = vpop.f32.mrf.mxu1 }
 0x62f   : > { %2038 = vst [vmem:[%s3350_s22 + $0x18] sm:$0xff] %v1984_v54  ;;  %v1976_v5 = vadd.f32 %v2236_v41, %v1975_v12 }
 0x631   : > { %2036 = vst [vmem:[%s3350_s22 + $0x8] sm:$0xff] %v1976_v5  ;;  %v2526_v7 = vpop.f32.mrf.mxu1 }
 0x632   : > { %v1997_v46 = vadd.f32 %v2526_v7, %v2236_v41 }
 0x633   : > { %v1988_v32 = vpop.f32.mrf.mxu1 }
 0x634   : > { %2041 = vst [vmem:[%s3350_s22 + $0x30] sm:$0xff] %v1997_v46  ;;  %v1989_v45 = vadd.f32 %v2236_v41, %v1988_v32 }
 0x635   : > { %v2527_v8 = vpop.f32.mrf.mxu1 }
 0x636   : > { %2039 = vst [vmem:[%s3350_s22 + $0x20] sm:$0xff] %v1989_v45  ;;  %v2000_v49 = vadd.f32 %v2527_v8, %v2236_v41 }
 0x637   : > { %v1991_v50 = vpop.f32.mrf.mxu1 }
 0x638   : > { %2042 = vst [vmem:[%s3350_s22 + $0x38] sm:$0xff] %v2000_v49  ;;  %v1992_v60 = vadd.f32 %v2236_v41, %v1991_v50 }
 0x639   : > { %v2530_v44 = vpop.f32.mrf.mxu1 }
 0x63a   : > { %2040 = vst [vmem:[%s3350_s22 + $0x28] sm:$0xff] %v1992_v60  ;;  %v2013_v29 = vadd.f32 %v2530_v44, %v2236_v41 }
 0x63b   : > { %v2004_v2 = vpop.f32.mrf.mxu1 }
 0x63c   : > { %2045 = vst [vmem:[%s3350_s22 + $0x50] sm:$0xff] %v2013_v29  ;;  %v2005_v27 = vadd.f32 %v2236_v41, %v2004_v2 }
 0x63d   : > { %v2531_v58 = vpop.f32.mrf.mxu1 }
 0x63e   : > { %2043 = vst [vmem:[%s3350_s22 + $0x40] sm:$0xff] %v2005_v27  ;;  %v2016_v42 = vadd.f32 %v2531_v58, %v2236_v41 }
 0x63f   : > { %v2007_v34 = vpop.f32.mrf.mxu1 }
 0x640   : > { %2046 = vst [vmem:[%s3350_s22 + $0x58] sm:$0xff] %v2016_v42  ;;  %v2008_v47 = vadd.f32 %v2236_v41, %v2007_v34 }
 0x641   : > { %v2534_v10 = vpop.f32.mrf.mxu1 }
 0x642   : > { %2044 = vst [vmem:[%s3350_s22 + $0x48] sm:$0xff] %v2008_v47  ;;  %v2029_v39 = vadd.f32 %v2534_v10, %v2236_v41 }
 0x643   : > { %v2020_v11 = vpop.f32.mrf.mxu1 }
 0x644   : > { %2049 = vst [vmem:[%s3350_s22 + $0x70] sm:$0xff] %v2029_v39  ;;  %v2021_v15 = vadd.f32 %v2236_v41, %v2020_v11 }
 0x645   : > { %v2535_v3 = vpop.f32.mrf.mxu1 }
 0x646   : > { %2047 = vst [vmem:[%s3350_s22 + $0x60] sm:$0xff] %v2021_v15  ;;  %v2032_v9 = vadd.f32 %v2535_v3, %v2236_v41 }
 0x647   : > { %v2023_v20 = vpop.f32.mrf.mxu1 }
 0x648   : > { %2050 = vst [vmem:[%s3350_s22 + $0x78] sm:$0xff] %v2032_v9  ;;  %v2024_v13 = vadd.f32 %v2236_v41, %v2023_v20 }
 0x64a   : > { %2048 = vst [vmem:[%s3350_s22 + $0x68] sm:$0xff] %v2024_v13 }
 0x64b PF: > { %s24_s17 = sadd.s32 1, %s2751_s17   ;;  %s3403_s30 = sld [smem:[#allocation2_spill]] }
 0x64c   : > { %p21_p7 = scmp.ge.s32.totalorder %s24_s17, 6   ;;  %s3404_s28 = sld [smem:[#allocation3_spill]] }
 0x64d   : > { %s3405_s16 = sld [smem:[#allocation4_spill]]  ;;  %s3406_s29 = smov %s2743_s15 }
 0x64e   :  { %23 = sbr.rel (!%p21_p7) target bundleno = 3 (0x3), region = 112 }
 0x652   : > { %s3407_s15 = smov %s3404_s28 }

</bundles_post_ra>
